<compile_context>
chip_gen: v7x
topology: tpu7x:2x2x1
jax: 0.10.0
libtpu: 0.0.40
codegen_flags: <defaults>
</compile_context>

<pallas_src>
import math
import jax
import jax.numpy as jnp
from jax.experimental import pallas as pl
from jax.experimental.pallas import tpu as pltpu


LANE = 128


def _round_up(x, m):
    return ((x + m - 1) // m) * m


def make_odenet_kernel(num_head, d_model):
    nh = num_head
    hs = d_model // nh
    scale = 1.0 / math.sqrt(hs)

    def kernel(x_ref, w0_ref, b0_ref, w1_ref, b1_ref, mw_ref, mb_ref, o_ref):
        bc, n, i_dim = x_ref.shape                    # static block shape
        x = x_ref[...].reshape(bc * n, i_dim)         # fold batch into matmul rows

        # Fused K/Q/V FC nets: Linear -> tanh -> Linear.  w1 is block-diagonal
        # with each net's output in its own 128-lane slot, so the K/Q/V slices
        # below start at vreg boundaries (no cross-lane rotates).
        h = jnp.tanh(
            jnp.dot(x, w0_ref[...], preferred_element_type=jnp.float32)
            + b0_ref[...])
        qkv = (jnp.dot(h, w1_ref[...], preferred_element_type=jnp.float32)
               + b1_ref[...])

        k = qkv[:, 0 * LANE:0 * LANE + d_model]       # (bc*n, D), lane-aligned
        q = qkv[:, 1 * LANE:1 * LANE + d_model]
        v = qkv[:, 2 * LANE:2 * LANE + d_model]

        def heads(z):                                  # (bc*n, D) -> (bc*nh, n, hs)
            return jnp.transpose(z.reshape(bc, n, nh, hs),
                                 (0, 2, 1, 3)).reshape(bc * nh, n, hs)

        qh, kh, vh = heads(q), heads(k), heads(v)

        # One batched attention over batch*head: single einsum pair.
        s = jnp.einsum("bnd,bmd->bnm", qh, kh,
                       preferred_element_type=jnp.float32) * scale
        s2 = s.reshape(bc * nh * n, n)                 # 2-D tile for the softmax
        s2 = s2 - jnp.max(s2, axis=-1, keepdims=True)
        p = jnp.exp(s2)
        a = (p * pl.reciprocal(jnp.sum(p, axis=-1, keepdims=True), approx=False)
             ).reshape(bc * nh, n, n)
        r = qh + jnp.einsum("bnm,bmd->bnd", a, vh,
                            preferred_element_type=jnp.float32)

        # Back to (bc*n, D) with head i at columns [i*hs:(i+1)*hs] — exactly
        # torch.cat(... .split(batch, 0), dim=2) semantics.
        r = jnp.transpose(r.reshape(bc, nh, n, hs),
                          (0, 2, 1, 3)).reshape(bc * n, d_model)

        out = (jnp.dot(jnp.tanh(r), mw_ref[...],
                       preferred_element_type=jnp.float32) + mb_ref[...])
        o_ref[...] = out.reshape(bc, n, -1).astype(o_ref.dtype)  # lane-dense store

    return kernel


def pack_params(params):
    """Fuse + pad the per-net weights into lane-friendly kernel operands."""
    i_dim = params["K_w0"].shape[0]
    h_dim = params["K_w0"].shape[1]
    d_model = params["K_w1"].shape[1]

    ip = _round_up(i_dim, LANE)            # padded output lane count
    hcp = _round_up(3 * h_dim, LANE)       # fused hidden lane count

    # First layer: concat K/Q/V -> one (I, 3H) matmul; rows are NOT padded
    # (the MXU pads the short contraction internally), columns padded to hcp.
    w0 = jnp.concatenate([params["K_w0"], params["Q_w0"], params["V_w0"]], axis=1)
    b0 = jnp.concatenate([params["K_b0"], params["Q_b0"], params["V_b0"]], axis=1)
    w0p = jnp.zeros((i_dim, hcp), jnp.float32).at[:, :3 * h_dim].set(w0)
    b0p = jnp.zeros((1, hcp), jnp.float32).at[:, :3 * h_dim].set(b0)

    # Second layer: block-diagonal, each of K/Q/V in its own 128-lane slot so
    # the in-kernel slices are vreg-aligned.
    w1p = jnp.zeros((hcp, 3 * LANE), jnp.float32)
    b1p = jnp.zeros((1, 3 * LANE), jnp.float32)
    for idx, name in enumerate(("K", "Q", "V")):
        w1p = w1p.at[idx * h_dim:(idx + 1) * h_dim,
                     idx * LANE:idx * LANE + d_model].set(params[f"{name}_w1"])
        b1p = b1p.at[:, idx * LANE:idx * LANE + d_model].set(params[f"{name}_b1"])

    # Output projection, columns padded to ip (padded cols are exactly zero).
    mwp = jnp.zeros((d_model, ip), jnp.float32).at[:, :i_dim].set(params["M_w"])
    mbp = jnp.zeros((1, ip), jnp.float32).at[:, :i_dim].set(params["M_b"])

    return (w0p, b0p, w1p, b1p, mwp, mbp), (ip, d_model)


def odenet_forward(t, x, params, num_head):
    """Pallas implementation of ODEnet.forward(t, x). t is unused (as in torch)."""
    del t
    batch, seq, i_dim = x.shape
    weights, (ip, d_model) = pack_params(params)

    def full_spec(shape):
        nd = len(shape)
        return pl.BlockSpec(shape, lambda b, _nd=nd: (0,) * _nd)

    # x is passed unpadded: last block dim (i_dim) equals the full array dim,
    # which is legal for BlockSpec; output stays 128-lane padded (dense vst).
    in_specs = ([pl.BlockSpec((batch, seq, i_dim), lambda b: (0, 0, 0))]
                + [full_spec(w.shape) for w in weights])
    out_specs = pl.BlockSpec((batch, seq, ip), lambda b: (0, 0, 0))

    # Advisory cost estimate so XLA can overlap the (tiny) call with
    # surrounding work.
    hcp = weights[0].shape[1]
    flops = (2 * batch * seq * (i_dim * hcp + hcp * weights[2].shape[1]
                                + d_model * ip)
             + 4 * batch * num_head * seq * seq * (d_model // num_head))
    transcendentals = batch * seq * (hcp + d_model) + batch * num_head * seq * seq
    bytes_accessed = 4 * (x.size + sum(int(w.size) for w in weights)
                          + batch * seq * ip)

    kernel = make_odenet_kernel(num_head, d_model)
    # NOTE: grid=(1,) — single step on every chip generation.  If the ODE
    # solver evaluates several stages per step, fold them along this grid axis
    # (x-block index_map selecting the stage) to amortize per-call overhead.
    outp = pl.pallas_call(
        kernel,
        out_shape=jax.ShapeDtypeStruct((batch, seq, ip), x.dtype),
        grid_spec=pltpu.PrefetchScalarGridSpec(
            num_scalar_prefetch=0,
            grid=(1,),
            in_specs=in_specs,
            out_specs=out_specs,
        ),
        compiler_params=pltpu.CompilerParams(
            dimension_semantics=("arbitrary",)),
        cost_estimate=pl.CostEstimate(flops=int(flops),
                                      transcendentals=int(transcendentals),
                                      bytes_accessed=int(bytes_accessed)),
    )(x, *weights)

    return outp[..., :i_dim]             # slice off lane padding


def init_params(key, i_dim, f_dim):
    """Deterministic parameter init (PyTorch-Linear-style uniform).

    Weights are stored as (in_features, out_features) so the kernel does x @ W.
    Biases are stored as (1, out_features) for clean 2-D broadcasting on TPU.
    """
    h_dim, d_model = f_dim
    keys = jax.random.split(key, 16)

    def linear(kw, kb, fan_in, fan_out):
        bound = 1.0 / math.sqrt(fan_in)
        w = jax.random.uniform(kw, (fan_in, fan_out), jnp.float32, -bound, bound)
        b = jax.random.uniform(kb, (1, fan_out), jnp.float32, -bound, bound)
        return w, b

    p = {}
    ki = iter(range(16))
    for name in ("K", "Q", "V"):
        w0, b0 = linear(keys[next(ki)], keys[next(ki)], i_dim, h_dim)
        w1, b1 = linear(keys[next(ki)], keys[next(ki)], h_dim, d_model)
        p[f"{name}_w0"], p[f"{name}_b0"] = w0, b0
        p[f"{name}_w1"], p[f"{name}_b1"] = w1, b1
    mw, mb = linear(keys[next(ki)], keys[next(ki)], d_model, i_dim)
    p["M_w"], p["M_b"] = mw, mb
    return p


def reference_forward(t, x, params, num_head):
    """Pure-JAX reference mirroring the PyTorch split/cat semantics exactly."""
    del t
    batch = x.shape[0]

    def fc(x, a):
        h = jnp.tanh(x @ params[f"{a}_w0"] + params[f"{a}_b0"])
        return h @ params[f"{a}_w1"] + params[f"{a}_b1"]

    k, q, v = fc(x, "K"), fc(x, "Q"), fc(x, "V")
    d_model = k.shape[-1]
    hs = d_model // num_head
    split = lambda z: jnp.concatenate(
        [z[:, :, i * hs:(i + 1) * hs] for i in range(num_head)], axis=0)
    k, q, v = split(k), split(q), split(v)
    a = jnp.einsum("bnd,bmd->bnm", q, k) / math.sqrt(hs)
    a = jax.nn.softmax(a, axis=2)
    r = q + jnp.einsum("bnm,bmd->bnd", a, v)
    r = jnp.concatenate(
        [r[i * batch:(i + 1) * batch] for i in range(num_head)], axis=2)
    return jnp.tanh(r) @ params["M_w"] + params["M_b"]


if __name__ == "__main__":
    B, N, I = 2, 8, 16          # batch, sequence length, input feature dim
    f_dim = [32, 32]            # FCnet hidden + output dims
    num_head = 4

    key = jax.random.PRNGKey(0)
    kx, kp = jax.random.split(key)
    x = jax.random.normal(kx, (B, N, I), dtype=jnp.float32)
    params = init_params(kp, I, f_dim)
    t = jnp.float32(0.0)        # unused by forward, kept for API parity

    out = odenet_forward(t, x, params, num_head)
    out = jax.block_until_ready(out)

    ref = reference_forward(t, x, params, num_head)
    assert out.shape == (B, N, I)
    # Exact softmax reciprocal now; residual tolerance covers TPU default
    # matmul precision in the pure-JAX reference.
    assert jnp.allclose(out, ref, atol=2e-3, rtol=2e-3), "mismatch vs JAX reference"

    print("KERNEL_OK")
</pallas_src>

<mosaic_0001>
module attributes {stable_mosaic.version = 11 : i64} {
  func.func @kernel(%arg0: i32, %arg1: memref<2x8x16xf32, #tpu.memory_space<vmem>>, %arg2: memref<16x128xf32, #tpu.memory_space<vmem>>, %arg3: memref<1x128xf32, #tpu.memory_space<vmem>>, %arg4: memref<128x384xf32, #tpu.memory_space<vmem>>, %arg5: memref<1x384xf32, #tpu.memory_space<vmem>>, %arg6: memref<32x128xf32, #tpu.memory_space<vmem>>, %arg7: memref<1x128xf32, #tpu.memory_space<vmem>>, %arg8: memref<2x8x128xf32, #tpu.memory_space<vmem>>) attributes {dimension_semantics = [#tpu.dimension_semantics<arbitrary>], iteration_bounds = array<i64: 1>, scalar_prefetch = 0 : i64, scratch_operands = 0 : i64, tpu.core_type = #tpu.core_type<tc>, window_params = [{pipeline_mode = #tpu.pipeline_mode<synchronous>, transform_indices = @transform_0, window_bounds = array<i64: 2, 8, 16>}, {pipeline_mode = #tpu.pipeline_mode<synchronous>, transform_indices = @transform_1, window_bounds = array<i64: 16, 128>}, {pipeline_mode = #tpu.pipeline_mode<synchronous>, transform_indices = @transform_2, window_bounds = array<i64: 1, 128>}, {pipeline_mode = #tpu.pipeline_mode<synchronous>, transform_indices = @transform_3, window_bounds = array<i64: 128, 384>}, {pipeline_mode = #tpu.pipeline_mode<synchronous>, transform_indices = @transform_4, window_bounds = array<i64: 1, 384>}, {pipeline_mode = #tpu.pipeline_mode<synchronous>, transform_indices = @transform_5, window_bounds = array<i64: 32, 128>}, {pipeline_mode = #tpu.pipeline_mode<synchronous>, transform_indices = @transform_6, window_bounds = array<i64: 1, 128>}, {pipeline_mode = #tpu.pipeline_mode<synchronous>, transform_indices = @transform_7, window_bounds = array<i64: 2, 8, 128>}]} {
    %c0 = arith.constant 0 : index
    %c0_0 = arith.constant 0 : index
    %c0_1 = arith.constant 0 : index
    %0 = vector.load %arg1[%c0, %c0_0, %c0_1] : memref<2x8x16xf32, #tpu.memory_space<vmem>>, vector<2x8x16xf32>
    %1 = vector.shape_cast %0 : vector<2x8x16xf32> to vector<16x16xf32>
    %c0_2 = arith.constant 0 : index
    %c0_3 = arith.constant 0 : index
    %2 = vector.load %arg2[%c0_2, %c0_3] : memref<16x128xf32, #tpu.memory_space<vmem>>, vector<16x128xf32>
    %cst = arith.constant dense<0.000000e+00> : vector<16x128xf32>
    %3 = tpu.matmul %1, %2, %cst {dimension_numbers = #tpu.dot_dimension_numbers<[1], [0], [0], [1], [0, 0, 1, 1], [], []>} : vector<16x16xf32>, vector<16x128xf32>, vector<16x128xf32> -> vector<16x128xf32>
    %c0_4 = arith.constant 0 : index
    %c0_5 = arith.constant 0 : index
    %4 = vector.load %arg3[%c0_4, %c0_5] : memref<1x128xf32, #tpu.memory_space<vmem>>, vector<1x128xf32>
    %5 = vector.broadcast %4 : vector<1x128xf32> to vector<16x128xf32>
    %6 = arith.addf %3, %5 : vector<16x128xf32>
    %7 = math.tanh %6 : vector<16x128xf32>
    %c0_6 = arith.constant 0 : index
    %c0_7 = arith.constant 0 : index
    %8 = vector.load %arg4[%c0_6, %c0_7] : memref<128x384xf32, #tpu.memory_space<vmem>>, vector<128x384xf32>
    %cst_8 = arith.constant dense<0.000000e+00> : vector<16x384xf32>
    %9 = tpu.matmul %7, %8, %cst_8 {dimension_numbers = #tpu.dot_dimension_numbers<[1], [0], [0], [1], [0, 0, 1, 1], [], []>} : vector<16x128xf32>, vector<128x384xf32>, vector<16x384xf32> -> vector<16x384xf32>
    %c0_9 = arith.constant 0 : index
    %c0_10 = arith.constant 0 : index
    %10 = vector.load %arg5[%c0_9, %c0_10] : memref<1x384xf32, #tpu.memory_space<vmem>>, vector<1x384xf32>
    %11 = vector.broadcast %10 : vector<1x384xf32> to vector<16x384xf32>
    %12 = arith.addf %9, %11 : vector<16x384xf32>
    %13 = vector.extract_strided_slice %12 {offsets = [0, 0], sizes = [16, 32], strides = [1, 1]} : vector<16x384xf32> to vector<16x32xf32>
    %14 = vector.extract_strided_slice %12 {offsets = [0, 128], sizes = [16, 32], strides = [1, 1]} : vector<16x384xf32> to vector<16x32xf32>
    %15 = vector.extract_strided_slice %12 {offsets = [0, 256], sizes = [16, 32], strides = [1, 1]} : vector<16x384xf32> to vector<16x32xf32>
    %16 = vector.shape_cast %14 : vector<16x32xf32> to vector<2x8x4x8xf32>
    %17 = tpu.transpose %16, [0, 2, 1, 3] : vector<2x8x4x8xf32> -> vector<2x4x8x8xf32>
    %18 = vector.shape_cast %17 : vector<2x4x8x8xf32> to vector<8x8x8xf32>
    %19 = vector.shape_cast %13 : vector<16x32xf32> to vector<2x8x4x8xf32>
    %20 = tpu.transpose %19, [0, 2, 1, 3] : vector<2x8x4x8xf32> -> vector<2x4x8x8xf32>
    %21 = vector.shape_cast %20 : vector<2x4x8x8xf32> to vector<8x8x8xf32>
    %22 = vector.shape_cast %15 : vector<16x32xf32> to vector<2x8x4x8xf32>
    %23 = tpu.transpose %22, [0, 2, 1, 3] : vector<2x8x4x8xf32> -> vector<2x4x8x8xf32>
    %24 = vector.shape_cast %23 : vector<2x4x8x8xf32> to vector<8x8x8xf32>
    "tpu.trace_start"() <{level = 10 : i32, message = "bnd,bmd->bnm"}> : () -> ()
    %cst_11 = arith.constant dense<0.000000e+00> : vector<8x8x8xf32>
    %25 = tpu.matmul %18, %21, %cst_11 {dimension_numbers = #tpu.dot_dimension_numbers<[2], [2], [1], [1], [0, 0, 0, 1, 1, 1], [0], [0]>} : vector<8x8x8xf32>, vector<8x8x8xf32>, vector<8x8x8xf32> -> vector<8x8x8xf32>
    "tpu.trace_stop"() : () -> ()
    %cst_12 = arith.constant 0.353553385 : f32
    %26 = vector.broadcast %cst_12 : f32 to vector<8x8x8xf32>
    %27 = arith.mulf %25, %26 : vector<8x8x8xf32>
    %28 = vector.shape_cast %27 : vector<8x8x8xf32> to vector<64x8xf32>
    %cst_13 = arith.constant dense<0xFF800000> : vector<64xf32>
    %29 = vector.multi_reduction <maximumf>, %28, %cst_13 [1] : vector<64x8xf32> to vector<64xf32>
    %30 = vector.shape_cast %29 : vector<64xf32> to vector<64x1xf32>
    %31 = vector.broadcast %30 : vector<64x1xf32> to vector<64x8xf32>
    %32 = arith.subf %28, %31 : vector<64x8xf32>
    %33 = math.exp %32 : vector<64x8xf32>
    %cst_14 = arith.constant dense<0.000000e+00> : vector<64xf32>
    %34 = vector.multi_reduction <add>, %33, %cst_14 [1] : vector<64x8xf32> to vector<64xf32>
    %35 = vector.shape_cast %34 : vector<64xf32> to vector<64x1xf32>
    %36 = tpu.reciprocal %35 : vector<64x1xf32> -> vector<64x1xf32>
    %37 = vector.broadcast %36 : vector<64x1xf32> to vector<64x8xf32>
    %38 = arith.mulf %33, %37 : vector<64x8xf32>
    %39 = vector.shape_cast %38 : vector<64x8xf32> to vector<8x8x8xf32>
    "tpu.trace_start"() <{level = 10 : i32, message = "bnm,bmd->bnd"}> : () -> ()
    %cst_15 = arith.constant dense<0.000000e+00> : vector<8x8x8xf32>
    %40 = tpu.matmul %39, %24, %cst_15 {dimension_numbers = #tpu.dot_dimension_numbers<[2], [1], [1], [2], [0, 0, 0, 1, 1, 2], [0], [0]>} : vector<8x8x8xf32>, vector<8x8x8xf32>, vector<8x8x8xf32> -> vector<8x8x8xf32>
    "tpu.trace_stop"() : () -> ()
    %41 = arith.addf %18, %40 : vector<8x8x8xf32>
    %42 = vector.shape_cast %41 : vector<8x8x8xf32> to vector<2x4x8x8xf32>
    %43 = tpu.transpose %42, [0, 2, 1, 3] : vector<2x4x8x8xf32> -> vector<2x8x4x8xf32>
    %44 = vector.shape_cast %43 : vector<2x8x4x8xf32> to vector<16x32xf32>
    %45 = math.tanh %44 : vector<16x32xf32>
    %c0_16 = arith.constant 0 : index
    %c0_17 = arith.constant 0 : index
    %46 = vector.load %arg6[%c0_16, %c0_17] : memref<32x128xf32, #tpu.memory_space<vmem>>, vector<32x128xf32>
    %cst_18 = arith.constant dense<0.000000e+00> : vector<16x128xf32>
    %47 = tpu.matmul %45, %46, %cst_18 {dimension_numbers = #tpu.dot_dimension_numbers<[1], [0], [0], [1], [0, 0, 1, 1], [], []>} : vector<16x32xf32>, vector<32x128xf32>, vector<16x128xf32> -> vector<16x128xf32>
    %c0_19 = arith.constant 0 : index
    %c0_20 = arith.constant 0 : index
    %48 = vector.load %arg7[%c0_19, %c0_20] : memref<1x128xf32, #tpu.memory_space<vmem>>, vector<1x128xf32>
    %49 = vector.broadcast %48 : vector<1x128xf32> to vector<16x128xf32>
    %50 = arith.addf %47, %49 : vector<16x128xf32>
    %51 = vector.shape_cast %50 : vector<16x128xf32> to vector<2x8x128xf32>
    %c0_21 = arith.constant 0 : index
    %c0_22 = arith.constant 0 : index
    %c0_23 = arith.constant 0 : index
    %52 = vector.load %arg8[%c0_21, %c0_22, %c0_23] : memref<2x8x128xf32, #tpu.memory_space<vmem>>, vector<2x8x128xf32>
    tpu.vector_store %arg8[%c0_21, %c0_22, %c0_23], %51 {strides = array<i32>} : memref<2x8x128xf32, #tpu.memory_space<vmem>>, vector<2x8x128xf32>,
    return
  }
  func.func @transform_0(%arg0: i32) -> (i32, i32, i32) {
    %c0_i32 = arith.constant 0 : i32
    %c0_i32_0 = arith.constant 0 : i32
    %c0_i32_1 = arith.constant 0 : i32
    %c0_i32_2 = arith.constant 0 : i32
    return %c0_i32, %c0_i32_0, %c0_i32_1 : i32, i32, i32
  }
  func.func @transform_1(%arg0: i32) -> (i32, i32) {
    %c0_i32 = arith.constant 0 : i32
    %c0_i32_0 = arith.constant 0 : i32
    %c0_i32_1 = arith.constant 0 : i32
    return %c0_i32, %c0_i32_0 : i32, i32
  }
  func.func @transform_2(%arg0: i32) -> (i32, i32) {
    %c0_i32 = arith.constant 0 : i32
    %c0_i32_0 = arith.constant 0 : i32
    %c0_i32_1 = arith.constant 0 : i32
    return %c0_i32, %c0_i32_0 : i32, i32
  }
  func.func @transform_3(%arg0: i32) -> (i32, i32) {
    %c0_i32 = arith.constant 0 : i32
    %c0_i32_0 = arith.constant 0 : i32
    %c0_i32_1 = arith.constant 0 : i32
    return %c0_i32, %c0_i32_0 : i32, i32
  }
  func.func @transform_4(%arg0: i32) -> (i32, i32) {
    %c0_i32 = arith.constant 0 : i32
    %c0_i32_0 = arith.constant 0 : i32
    %c0_i32_1 = arith.constant 0 : i32
    return %c0_i32, %c0_i32_0 : i32, i32
  }
  func.func @transform_5(%arg0: i32) -> (i32, i32) {
    %c0_i32 = arith.constant 0 : i32
    %c0_i32_0 = arith.constant 0 : i32
    %c0_i32_1 = arith.constant 0 : i32
    return %c0_i32, %c0_i32_0 : i32, i32
  }
  func.func @transform_6(%arg0: i32) -> (i32, i32) {
    %c0_i32 = arith.constant 0 : i32
    %c0_i32_0 = arith.constant 0 : i32
    %c0_i32_1 = arith.constant 0 : i32
    return %c0_i32, %c0_i32_0 : i32, i32
  }
  func.func @transform_7(%arg0: i32) -> (i32, i32, i32) {
    %c0_i32 = arith.constant 0 : i32
    %c0_i32_0 = arith.constant 0 : i32
    %c0_i32_1 = arith.constant 0 : i32
    %c0_i32_2 = arith.constant 0 : i32
    return %c0_i32, %c0_i32_0, %c0_i32_1 : i32, i32, i32
  }
}

</mosaic_0001>

<bundles_post_ra>
// kernel: tpu_custom_call.1
= control target key start
LH: loop header
LB: loop body
LE: loop exit
PB: predicated region body
PF: predicated region fallthrough
CT: control target
= control target key end

     0   :  { %12 = vsyncpa [#allocation3], 0  ;;  %s4022_s0 = inlined_call_operand.hbm [shape: f32[2,8,16], index: 0, kind: input, shape index: {}]   ;;  %s4023_s1 = inlined_call_operand.hbm [shape: f32[16,128], index: 1, kind: input, shape index: {}]   ;;  %s4024_s2 = inlined_call_operand.vmem [shape: f32[1,128], index: 2, kind: input, shape index: {}]   ;;  %s4025_s3 = inlined_call_operand.hbm [shape: f32[128,384], index: 3, kind: input, shape index: {}]   ;;  %s4026_s4 = inlined_call_operand.vmem [shape: f32[1,384], index: 4, kind: input, shape index: {}]   ;;  %s4027_s5 = inlined_call_operand.hbm [shape: f32[32,128], index: 5, kind: input, shape index: {}]   ;;  %s4028_s6 = inlined_call_operand.vmem [shape: f32[1,128], index: 6, kind: input, shape index: {}]   ;;  %s4029_s7 = inlined_call_operand.hbm [shape: f32[2,8,128], index: 7, kind: output, shape index: {}]  }
   0x1   :  { %13 = vsyncpa [#allocation6], 0 }
   0x2   :  { %14 = vsyncpa [#allocation9], 0 }
   0x3   :  { %15 = vsyncpa [#allocation4], 0  ;;  %s3476_s24 = smov [#allocation5]   ;;  %s3477_s26 = smov [#allocation2]  }
   0x4   :  { %s33_s25 = sshll.u32 %s3476_s24, 4  ;;  %s21_s27 = sshll.u32 %s3477_s26, 4  ;;  %s34_s25 = int_to_ptr.vmem [resolvable:$true] %s33_s25  ;;  %s3533_s27 = int_to_ptr.vmem [resolvable:$true] %s21_s27 }
   0x5   :  { %s3358_s30 = scalar_lea.hbm %s4023_s1, 256 }
   0x6   :  { %p3359_p0 = scmp.ne.s32.totalorder %s4023_s1, %s3358_s30  ;;  %p3362_p1 = scmp.lt.u32.totalorder %s3358_s30, %s4023_s1 }
   0x8   :  { %p3364_p2 = pnand %p3362_p1, %p3359_p0 }
   0xa   :  { %3367 = shalt.err (!%p3364_p2)
}
   0xb   :  { %s3368_s12 = scalar_lea.vmem %s34_s25, 256  ;;  %p3373_p4 = scmp.lt.s32.totalorder %s34_s25, %s34_s25 }
   0xc   :  { %p3369_p3 = scmp.ne.s32.totalorder %s34_s25, %s3368_s12  ;;  %p3374_p5 = scmp.lt.s32.totalorder %s3368_s12, %s3368_s12 }
   0xe   :  { %p3375_p6 = por %p3374_p5, %p3373_p4 }
  0x10   :  { %p3376_p7 = pnand %p3375_p6, %p3369_p3 }
  0x12   :  { %3379 = shalt.err (!%p3376_p7)
}
  0x13   :  { %s3478_s13 = smov 128   ;;  %s3479_s14 = smov 8  }
  0x14   :  { %39 = dma.hbm_to_vmem [thread:$0]  %s4023_s1, 256, %s34_s25, [#allocation6], %s3478_s13, %s3478_s13, %s3479_s14  }
  0x15   :  { %s3380_s19 = scalar_lea.hbm %s4022_s0, 256 }
  0x16   :  { %p3381_p8 = scmp.ne.s32.totalorder %s4022_s0, %s3380_s19  ;;  %p3384_p9 = scmp.lt.u32.totalorder %s3380_s19, %s4022_s0 }
  0x18   :  { %p3386_p10 = pnand %p3384_p9, %p3381_p8 }
  0x1a   :  { %3389 = shalt.err (!%p3386_p10)
}
  0x1b   :  { %s3390_s24 = scalar_lea.vmem %s3533_s27, 256  ;;  %p3395_p12 = scmp.lt.s32.totalorder %s3533_s27, %s3533_s27 }
  0x1c   :  { %p3391_p11 = scmp.ne.s32.totalorder %s3533_s27, %s3390_s24  ;;  %p3396_p13 = scmp.lt.s32.totalorder %s3390_s24, %s3390_s24 }
  0x1e   :  { %p3397_p0 = por %p3396_p13, %p3395_p12 }
  0x20   :  { %p3398_p1 = pnand %p3397_p0, %p3391_p11 }
  0x22   :  { %3401 = shalt.err (!%p3398_p1)
}
  0x23   :  { %27 = dma.hbm_to_vmem [thread:$0]  %s4022_s0, 256, %s3533_s27, [#allocation3], %s3478_s13, %s3478_s13, %s3479_s14  }
  0x24   :  { %s3480_s26 = smov [#allocation7]   ;;  %s3402_s8 = scalar_lea.hbm %s4025_s3, 6144 }
  0x25   :  { %s47_s28 = sshll.u32 %s3480_s26, 4  ;;  %p3403_p2 = scmp.ne.s32.totalorder %s4025_s3, %s3402_s8  ;;  %s48_s28 = int_to_ptr.vmem [resolvable:$true] %s47_s28 }
  0x26   :  { %p3406_p3 = scmp.lt.u32.totalorder %s3402_s8, %s4025_s3 }
  0x28   :  { %p3408_p4 = pnand %p3406_p3, %p3403_p2 }
  0x2a   :  { %3411 = shalt.err (!%p3408_p4)
}
  0x2b   :  { %s3412_s15 = scalar_lea.vmem %s48_s28, 6144  ;;  %p3417_p6 = scmp.lt.s32.totalorder %s48_s28, %s48_s28 }
  0x2c   :  { %p3413_p5 = scmp.ne.s32.totalorder %s48_s28, %s3412_s15  ;;  %p3418_p7 = scmp.lt.s32.totalorder %s3412_s15, %s3412_s15 }
  0x2e   :  { %p3419_p8 = por %p3418_p7, %p3417_p6 }
  0x30   :  { %p3420_p9 = pnand %p3419_p8, %p3413_p5 }
  0x32   :  { %3423 = shalt.err (!%p3420_p9)
}
  0x33   :  { %s3481_s0 = smov 384   ;;  %s3482_s27 = smov 24  }
  0x34   :  { %53 = dma.hbm_to_vmem [thread:$0]  %s4025_s3, 6144, %s48_s28, [#allocation6], %s3481_s0, %s3481_s0, %s3482_s27  }
  0x35   :  { %s3483_s18 = smov [#allocation8]   ;;  %s3424_s22 = scalar_lea.hbm %s4027_s5, 512 }
  0x36   :  { %s61_s19 = sshll.u32 %s3483_s18, 4  ;;  %p3425_p10 = scmp.ne.s32.totalorder %s4027_s5, %s3424_s22  ;;  %s62_s19 = int_to_ptr.vmem [resolvable:$true] %s61_s19 }
  0x37   :  { %p3428_p11 = scmp.lt.u32.totalorder %s3424_s22, %s4027_s5 }
  0x39   :  { %p3430_p12 = pnand %p3428_p11, %p3425_p10 }
  0x3b   :  { %3433 = shalt.err (!%p3430_p12)
}
  0x3c   :  { %s3434_s26 = scalar_lea.vmem %s62_s19, 512  ;;  %p3439_p0 = scmp.lt.s32.totalorder %s62_s19, %s62_s19 }
  0x3d   :  { %p3435_p13 = scmp.ne.s32.totalorder %s62_s19, %s3434_s26  ;;  %p3440_p1 = scmp.lt.s32.totalorder %s3434_s26, %s3434_s26 }
  0x3f   :  { %p3441_p2 = por %p3440_p1, %p3439_p0 }
  0x41   :  { %p3442_p3 = pnand %p3441_p2, %p3435_p13 }
  0x43   :  { %3445 = shalt.err (!%p3442_p3)
}
  0x44   :  { %67 = dma.hbm_to_vmem [thread:$0]  %s4027_s5, 512, %s62_s19, [#allocation9], %s3478_s13, %s3478_s13, %s3479_s14  }
  0x45   :  { %3468 = dma.done.wait [#allocation3], 256  }
  0x46   :  { %3469 = vsyncadd [#allocation3], 4294967040 }
  0x47   :  { %3470 = dma.done.wait [#allocation6], 6400  }
  0x48   :  { %3471 = vsyncadd [#allocation6], 4294960896 }
  0x49   :  { %3472 = dma.done.wait [#allocation9], 512  }
  0x4a   :  { %3473 = vsyncadd [#allocation9], 4294966784  ;;  %vm93_vm0 = vcmask 130048   ;;  %v84_v0 = vld [vmem:[#allocation5] sm:$0xff]  ;;  %v85_v1 = vld [vmem:[#allocation5 + $0x8] sm:$0xff]  ;;  %s3486_s9 = smov 120  }
  0x4b   :  { %v82_v2 = vld [vmem:[#allocation2] sm:$0xff]  ;;  %v3225_v3 = vpack.c.bf16 %v85_v1, %v84_v0  ;;  %v178_v4 = vld [vmem:[#allocation7 + $0x8] sm:$0xff]  ;;  %v180_v8 = vld [vmem:[#allocation7 + $0x18] sm:$0xff]  ;;  %vm3488_vm1 = vmmov 0   ;;  %vm1270_vm2 = vcmask 64512   ;;  %s3491_s10 = smov 16  }
  0x4c   :  { %3096 = vmatprep.mubr.msk.f32.mxu1 %vm93_vm0, %v82_v2  ;;  %v181_v5 = vld [vmem:[#allocation7 + $0x20] sm:$0xff]  ;;  %v179_v9 = vld [vmem:[#allocation7 + $0x10] sm:$0xff]  ;;  %v182_v10 = vld [vmem:[#allocation7 + $0x28] sm:$0xff]  ;;  %v3484_v2 = vmov 0.0   ;;  %vm2867_vm3 = vcmask 195584   ;;  %vm2883_vm4 = vcmask 261120  }
  0x4d   :  { %v3229_v6 = vpack.c.bf16 %v181_v5, %v178_v4  ;;  %v177_v7 = vld [vmem:[#allocation7] sm:$0xff]  ;;  %3226 = vmatprep.subr.bf16.mxu1 %v3225_v3  ;;  %v184_v11 = vld [vmem:[#allocation7 + $0x38] sm:$0xff]  ;;  %v187_v12 = vld [vmem:[#allocation7 + $0x50] sm:$0xff]  ;;  %v3261_v15 = vpack.c.bf16 %v182_v10, %v179_v9  ;;  %s3492_s15 = smov [#allocation10]  }
  0x4e   :  { %3228 = vmatpush3.bf16.msra.mxu1 %v3225_v3  ;;  %v83_v13 = vld [vmem:[#allocation2 + $0x8] sm:$0xff]  ;;  %v3231_v14 = vpack.c.bf16 %v180_v8, %v177_v7  ;;  %v185_v16 = vld [vmem:[#allocation7 + $0x40] sm:$0xff]  ;;  %v3233_v17 = vpack.c.bf16 %v187_v12, %v184_v11  ;;  %v183_v18 = vld [vmem:[#allocation7 + $0x30] sm:$0xff]  ;;  %s2972_s0 = sshll.u32 %s3492_s15, 4  ;;  %s2973_s0 = int_to_ptr.vmem [resolvable:$true] %s2972_s0 }
  0x4f   :  { %3230 = vmatprep.subr.bf16.mxu1 %v3229_v6  ;;  %v186_v19 = vld [vmem:[#allocation7 + $0x48] sm:$0xff]  ;;  %v188_v20 = vld [vmem:[#allocation7 + $0x58] sm:$0xff]  ;;  %3262 = vmatprep.subr.bf16.mxu0 %v3261_v15  ;;  %v193_v23 = vld [vmem:[#allocation7 + $0x80] sm:$0xff]  ;;  %p3451_p5 = scmp.lt.s32.totalorder %s2973_s0, %s2973_s0 }
  0x50   :  { %v3265_v21 = vpack.c.bf16 %v188_v20, %v185_v16  ;;  %v190_v22 = vld [vmem:[#allocation7 + $0x68] sm:$0xff]  ;;  %v191_v24 = vld [vmem:[#allocation7 + $0x70] sm:$0xff]  ;;  %3264 = vmatpush3.bf16.msra.mxu0 %v3261_v15  ;;  %v3235_v26 = vpack.c.bf16 %v186_v19, %v183_v18  ;;  %v189_v27 = vld [vmem:[#allocation7 + $0x60] sm:$0xff] }
  0x51   :  { %3097 = vmatmul.mubr.msk.f32.vlgmr.msra.gmra.mrb[0].mxu1 %vm93_vm0, %v83_v13  ;;  %v194_v25 = vld [vmem:[#allocation7 + $0x88] sm:$0xff]  ;;  %v3237_v29 = vpack.c.bf16 %v193_v23, %v190_v22  ;;  %v192_v30 = vld [vmem:[#allocation7 + $0x78] sm:$0xff]  ;;  %v197_v31 = vld [vmem:[#allocation7 + $0xa0] sm:$0xff] }
  0x52   :  { %3232 = vmatpush1.bf16.msra.mxu1 %v3231_v14  ;;  %3266 = vmatprep.subr.bf16.mxu0 %v3265_v21  ;;  %v3269_v28 = vpack.c.bf16 %v194_v25, %v191_v24  ;;  %v200_v32 = vld [vmem:[#allocation7 + $0xb8] sm:$0xff]  ;;  %v199_v34 = vld [vmem:[#allocation7 + $0xb0] sm:$0xff]  ;;  %v3239_v35 = vpack.c.bf16 %v192_v30, %v189_v27  ;;  %v198_v39 = vld [vmem:[#allocation7 + $0xa8] sm:$0xff] }
  0x53   :  { %3234 = vmatprep.subr.bf16.mxu1 %v3233_v17  ;;  %v196_v33 = vld [vmem:[#allocation7 + $0x98] sm:$0xff]  ;;  %v3273_v36 = vpack.c.bf16 %v200_v32, %v197_v31  ;;  %v195_v38 = vld [vmem:[#allocation7 + $0x90] sm:$0xff]  ;;  %v202_v40 = vld [vmem:[#allocation7 + $0xc8] sm:$0xff]  ;;  %306 = vmatprep.mubr.f32.mxu1 %v3484_v2 }
  0x54   :  { %3268 = vmatpush3.bf16.msra.mxu0 %v3265_v21  ;;  %v3241_v37 = vpack.c.bf16 %v199_v34, %v196_v33  ;;  %v205_v41 = vld [vmem:[#allocation7 + $0xe0] sm:$0xff]  ;;  %v3243_v42 = vpack.c.bf16 %v198_v39, %v195_v38  ;;  %v204_v45 = vld [vmem:[#allocation7 + $0xd8] sm:$0xff]  ;;  %v203_v46 = vld [vmem:[#allocation7 + $0xd0] sm:$0xff]  ;;  %v227_v21 = vlaneseq }
  0x55   :  { %3270 = vmatprep.subr.bf16.mxu0 %v3269_v28  ;;  %v3245_v43 = vpack.c.bf16 %v205_v41, %v202_v40  ;;  %v201_v44 = vld [vmem:[#allocation7 + $0xc0] sm:$0xff]  ;;  %v206_v48 = vld [vmem:[#allocation7 + $0xe8] sm:$0xff]  ;;  %v208_v50 = vld [vmem:[#allocation7 + $0xf8] sm:$0xff] }
  0x56   :  { %3236 = vmatpush1.bf16.msra.mxu1 %v3235_v26  ;;  %v3247_v47 = vpack.c.bf16 %v204_v45, %v201_v44  ;;  %v3277_v49 = vpack.c.bf16 %v206_v48, %v203_v46  ;;  %v211_v51 = vld [vmem:[#allocation7 + $0x110] sm:$0xff]  ;;  %v210_v54 = vld [vmem:[#allocation7 + $0x108] sm:$0xff]  ;;  %v209_v55 = vld [vmem:[#allocation7 + $0x100] sm:$0xff]  ;;  %v228_v22 = vshrl.u32 %v227_v21, 7  ;;  %v3490_v44 = vmov 1934713408  }
  0x57   :  { %3238 = vmatprep.subr.bf16.mxu1 %v3237_v29  ;;  %v3249_v52 = vpack.c.bf16 %v211_v51, %v208_v50  ;;  %v207_v53 = vld [vmem:[#allocation7 + $0xf0] sm:$0xff]  ;;  %v212_v57 = vld [vmem:[#allocation7 + $0x118] sm:$0xff]  ;;  %v214_v59 = vld [vmem:[#allocation7 + $0x128] sm:$0xff]  ;;  %v449_v45 = vunpack.c.l.s4 %v3490_v44 }
  0x58   :  { %3272 = vmatpush3.bf16.msra.mxu0 %v3269_v28  ;;  %v3251_v56 = vpack.c.bf16 %v210_v54, %v207_v53  ;;  %v3281_v58 = vpack.c.bf16 %v212_v57, %v209_v55  ;;  %v217_v60 = vld [vmem:[#allocation7 + $0x140] sm:$0xff]  ;;  %v216_v63 = vld [vmem:[#allocation7 + $0x138] sm:$0xff]  ;;  %v215_v0 = vld [vmem:[#allocation7 + $0x130] sm:$0xff]  ;;  %v229_v23 = vsub.s32 0, %v228_v22  ;;  %v237_v25 = vsub.s32 2, %v228_v22 }
  0x59   :  { %3274 = vmatprep.subr.bf16.mxu0 %v3273_v36  ;;  %v213_v61 = vld [vmem:[#allocation7 + $0x120] sm:$0xff]  ;;  %v3253_v62 = vpack.c.bf16 %v217_v60, %v214_v59  ;;  %v218_v1 = vld [vmem:[#allocation7 + $0x148] sm:$0xff]  ;;  %v220_v5 = vld [vmem:[#allocation7 + $0x158] sm:$0xff]  ;;  %v233_v27 = vsub.s32 1, %v228_v22 }
  0x5a   :  { %3240 = vmatpush1.bf16.msra.mxu1 %v3239_v35  ;;  %v3255_v3 = vpack.c.bf16 %v216_v63, %v213_v61  ;;  %v3285_v4 = vpack.c.bf16 %v218_v1, %v215_v0  ;;  %v223_v6 = vld [vmem:[#allocation7 + $0x170] sm:$0xff]  ;;  %v222_v9 = vld [vmem:[#allocation7 + $0x168] sm:$0xff]  ;;  %v221_v10 = vld [vmem:[#allocation7 + $0x160] sm:$0xff] }
  0x5b   :  { %3242 = vmatprep.subr.bf16.mxu1 %v3241_v37  ;;  %v219_v7 = vld [vmem:[#allocation7 + $0x150] sm:$0xff]  ;;  %v3257_v8 = vpack.c.bf16 %v223_v6, %v220_v5  ;;  %v224_v11 = vld [vmem:[#allocation7 + $0x178] sm:$0xff]  ;;  %v2986_v14 = vld [vmem:[%s4024_s2] ss:$0 sm:$0xff]  ;;  %s3485_s2 = smov 104  }
  0x5c   :  { %3276 = vmatpush3.bf16.msra.mxu0 %v3273_v36  ;;  %v3259_v12 = vpack.c.bf16 %v222_v9, %v219_v7  ;;  %v3289_v13 = vpack.c.bf16 %v224_v11, %v221_v10  ;;  %v225_v24 = vld [vmem:[%s4026_s4] sm:$0x7]  ;;  %s3487_s4 = smov 112  }
  0x5d   :  { %3278 = vmatprep.subr.bf16.mxu0 %v3277_v49  ;;  %v230_v26 = vrot.slane %v225_v24, %v229_v23  ;;  %v238_v28 = vrot.slane %v225_v24, %v237_v25  ;;  %v234_v31 = vrot.slane %v225_v24, %v233_v27 }
  0x5e   :  { %3244 = vmatpush1.bf16.msra.mxu1 %v3243_v42  ;;  %v3489_v42 = vmov 1983009808  }
  0x5f   :  { %3246 = vmatprep.subr.bf16.mxu1 %v3245_v43  ;;  %v417_v43 = vunpack.c.l.s4 %v3489_v42 }
  0x60   :  { %3280 = vmatpush3.bf16.msra.mxu0 %v3277_v49  ;;  %v450_v49 = vunpack.c.0.s8 %v449_v45 }
  0x61   :  { %3282 = vmatprep.subr.bf16.mxu0 %v3281_v58  ;;  %v418_v46 = vunpack.c.0.s8 %v417_v43 }
  0x62   :  { %3248 = vmatpush1.bf16.msra.mxu1 %v3247_v47  ;;  %v3644_v57 = vsub.s32 %v450_v49, %v228_v22 }
  0x63   :  { %3250 = vmatprep.subr.bf16.mxu1 %v3249_v52  ;;  %v3642_v50 = vsub.s32 %v418_v46, %v228_v22 }
  0x64   :  { %3284 = vmatpush3.bf16.msra.mxu0 %v3281_v58 }
  0x65   :  { %3286 = vmatprep.subr.bf16.mxu0 %v3285_v4 }
  0x66   :  { %3252 = vmatpush1.bf16.msra.mxu1 %v3251_v56 }
  0x67   :  { %3254 = vmatprep.subr.bf16.mxu1 %v3253_v62 }
  0x68   :  { %3288 = vmatpush3.bf16.msra.mxu0 %v3285_v4 }
  0x69   :  { %3290 = vmatprep.subr.bf16.mxu0 %v3289_v13 }
  0x6a   :  { %3256 = vmatpush1.bf16.msra.mxu1 %v3255_v3 }
  0x6b   :  { %3258 = vmatprep.subr.bf16.mxu1 %v3257_v8 }
  0x6c   :  { %3292 = vmatpush3.bf16.msra.mxu0 %v3289_v13 }
  0x6d   :  { %3134 = vmatprep.subr.mxu0 %v3484_v2 }
  0x6e   :  { %3260 = vmatpush1.bf16.msra.mxu1 %v3259_v12 }
  0x6f   :  { %3139 = vmatprep.subr.mxu1 %v3484_v2 }
 0x124   :  { %v3098_v15 = vpop.f32.mrb[0].mxu1 }
 0x125   :  { %v172_v16 = vadd.f32 %v3098_v15, %v2986_v14  ;;  %v166_v17 = vpop.f32.mrb[1].mxu1 }
 0x126   :  { %v167_v18 = vadd.f32 %v2986_v14, %v166_v17 }
 0x128   :  { %3318 = vtanh.f32 %v167_v18 }
 0x129   :  { %3320 = vtanh.f32 %v172_v16 }
 0x132   :  { %v3319_v19 = vpop.eup %3318 }
 0x133   :  { %v3321_v20 = vpop.eup %3320  ;;  %307 = vmatmul.mubr.f32.vlgmr.msra.gmra.mrb[2].mxu1 %v3319_v19  ;;  %3131 = vmatprep.mubr.f32.mxu0 %v3319_v19 }
 0x134   :  { %3132 = vmatmul.mubr.f32.vlgmr.msra.gmra.mrb[0].mxu0 %v3321_v20  ;;  %312 = vmatprep.mubr.f32.mxu1 %v3484_v2 }
 0x135   :  { %3136 = vmatprep.mubr.msk.f32.mxu0 %vm3488_vm1, %v3484_v2 }
 0x137   :  { %313 = vmatmul.mubr.f32.gmra.mrb[4].mxu1 %v3321_v20 }
 0x138   :  { %3141 = vmatprep.mubr.msk.f32.mxu1 %vm3488_vm1, %v3484_v2 }
 0x206   :  { %v308_v29 = vpop.f32.mrb[2].mxu1 }
 0x207   :  { %v309_v30 = vadd.f32 %v308_v29, %v230_v26  ;;  %v310_v32 = vpop.f32.mrb[3].mxu1  ;;  %v3133_v33 = vpop.f32.mrb[0].mxu0 }
 0x208   :  { %v3610_v34 = vadd.f32 %v3133_v33, %v238_v28  ;;  %v385_v35 = vpop.f32.mrb[1].mxu0  ;;  %v311_v37 = vadd.f32 %v310_v32, %v234_v31 }
 0x209   :  { %700 = vrot.lane.b32.xlu1 %v309_v30, %s3485_s2  ;;  %688 = vrot.lane.b32.xlu0 %v309_v30, %s3486_s9  ;;  %v3634_v41 = vadd.f32 %v385_v35, %v238_v28 }
 0x20a   :  { %v314_v36 = vpop.f32.mrb[4].mxu1 }
 0x20b   :  { %v316_v38 = vpop.f32.mrb[5].mxu1  ;;  %v3618_v39 = vadd.f32 %v314_v36, %v230_v26 }
 0x20c   :  { %v3624_v40 = vadd.f32 %v316_v38, %v234_v31 }
 0x20d   :  { %396 = vrot.lane.b32.xlu1 %v311_v37, %s3486_s9  ;;  %694 = vrot.lane.b32.xlu0 %v309_v30, %s3487_s4 }
 0x211   :  { %408 = vrot.lane.b32.xlu1 %v311_v37, %s3485_s2  ;;  %402 = vrot.lane.b32.xlu0 %v311_v37, %s3487_s4 }
 0x215   :  { %696 = vrot.lane.b32.xlu1 %v3618_v39, %s3487_s4  ;;  %690 = vrot.lane.b32.xlu0 %v3618_v39, %s3486_s9 }
 0x219   :  { %398 = vrot.lane.b32.xlu1 %v3624_v40, %s3486_s9  ;;  %702 = vrot.lane.b32.xlu0 %v3618_v39, %s3485_s2 }
 0x21d   :  { %410 = vrot.lane.b32.xlu1 %v3624_v40, %s3485_s2  ;;  %404 = vrot.lane.b32.xlu0 %v3624_v40, %s3487_s4 }
 0x221   :  { %980 = vrot.lane.b32.xlu1 %v3634_v41, %s3486_s9 }
 0x27b   :  { %v701_v47 = vpop.permute.xlu1 %700  ;;  %v689_v48 = vpop.permute.xlu0 %688 }
 0x27c   :  { %v722_v51 = vcombine.low %v689_v48, %v701_v47  ;;  %v723_v52 = vcombine.high %v689_v48, %v701_v47 }
 0x27e   :  { %v730_v58 = vrot.slane %v722_v51, %v3642_v50  ;;  %v737_v59 = vrot.slane %v723_v52, %v3642_v50 }
 0x27f   :  { %v397_v53 = vpop.permute.xlu1 %396  ;;  %v695_v54 = vpop.permute.xlu0 %694 }
 0x280   :  { %v706_v55 = vcombine.low %v309_v30, %v695_v54  ;;  %v707_v56 = vcombine.high %v309_v30, %v695_v54 }
 0x282   :  { %v714_v60 = vrot.slane %v706_v55, %v3642_v50  ;;  %v721_v61 = vrot.slane %v707_v56, %v3642_v50 }
 0x283   :  { %v409_v62 = vpop.permute.xlu1 %408  ;;  %v403_v63 = vpop.permute.xlu0 %402 }
 0x284   :  { %v738_v0 = vcombine.low %v714_v60, %v730_v58  ;;  %v739_v1 = vcombine.high %v714_v60, %v730_v58  ;;  %v754_v3 = vcombine.low %v721_v61, %v737_v59  ;;  %v755_v4 = vcombine.high %v721_v61, %v737_v59 }
 0x285   :  { %v430_v5 = vcombine.low %v397_v53, %v409_v62  ;;  %v431_v6 = vcombine.high %v397_v53, %v409_v62  ;;  %v414_v7 = vcombine.low %v311_v37, %v403_v63  ;;  %v415_v8 = vcombine.high %v311_v37, %v403_v63 }
 0x286   :  { %v746_v9 = vrot.slane %v738_v0, %v3644_v57  ;;  %v753_v10 = vrot.slane %v739_v1, %v3644_v57  ;;  %v762_v11 = vrot.slane %v754_v3, %v3644_v57  ;;  %v769_v12 = vrot.slane %v755_v4, %v3644_v57 }
 0x287   :  { %v438_v13 = vrot.slane %v430_v5, %v3642_v50  ;;  %v445_v14 = vrot.slane %v431_v6, %v3642_v50  ;;  %v422_v15 = vrot.slane %v414_v7, %v3642_v50  ;;  %v429_v16 = vrot.slane %v415_v8, %v3642_v50  ;;  %v697_v17 = vpop.permute.xlu1 %696  ;;  %v691_v18 = vpop.permute.xlu0 %690 }
 0x288   :  { %v842_v19 = vcombine.low %v746_v9, %v753_v10  ;;  %v2993_v20 = vcombine.high %v746_v9, %v753_v10  ;;  %v858_v21 = vcombine.low %v762_v11, %v769_v12  ;;  %v2994_v22 = vcombine.high %v762_v11, %v769_v12 }
 0x289   :  { %v446_v23 = vcombine.low %v422_v15, %v438_v13  ;;  %v447_v24 = vcombine.high %v422_v15, %v438_v13  ;;  %v462_v25 = vcombine.low %v429_v16, %v445_v14  ;;  %v463_v26 = vcombine.high %v429_v16, %v445_v14 }
 0x28a   :  { %v3659_v27 = vrot.slane %v842_v19, %v3642_v50  ;;  %v3662_v28 = vrot.slane %v2993_v20, %v3642_v50  ;;  %v3669_v36 = vrot.slane %v858_v21, %v3642_v50  ;;  %v3672_v37 = vrot.slane %v2994_v22, %v3642_v50 }
 0x28b   :  { %v454_v29 = vrot.slane %v446_v23, %v3644_v57  ;;  %v461_v30 = vrot.slane %v447_v24, %v3644_v57  ;;  %v470_v31 = vrot.slane %v462_v25, %v3644_v57  ;;  %v477_v32 = vrot.slane %v463_v26, %v3644_v57  ;;  %v399_v33 = vpop.permute.xlu1 %398  ;;  %v703_v35 = vpop.permute.xlu0 %702 }
 0x28c   :  { %v874_v38 = vcombine.low %v3659_v27, %v3662_v28  ;;  %v875_v42 = vcombine.high %v3659_v27, %v3662_v28  ;;  %v774_v47 = vcombine.low %v3618_v39, %v697_v17  ;;  %v775_v48 = vcombine.high %v3618_v39, %v697_v17 }
 0x28d   :  { %v550_v43 = vcombine.low %v454_v29, %v461_v30  ;;  %v2989_v44 = vcombine.high %v454_v29, %v461_v30  ;;  %v566_v45 = vcombine.low %v470_v31, %v477_v32  ;;  %v2990_v46 = vcombine.high %v470_v31, %v477_v32 }
 0x28e   :  { %v790_v49 = vcombine.low %v691_v18, %v703_v35  ;;  %v791_v51 = vcombine.high %v691_v18, %v703_v35  ;;  %v782_v56 = vrot.slane %v774_v47, %v3642_v50  ;;  %v789_v58 = vrot.slane %v775_v48, %v3642_v50 }
 0x28f   :  { %v3681_v52 = vrot.slane %v550_v43, %v3642_v50  ;;  %v3684_v53 = vrot.slane %v2989_v44, %v3642_v50  ;;  %v3687_v54 = vrot.slane %v566_v45, %v3642_v50  ;;  %v3690_v55 = vrot.slane %v2990_v46, %v3642_v50  ;;  %v411_v60 = vpop.permute.xlu1 %410  ;;  %v405_v61 = vpop.permute.xlu0 %404 }
 0x290   :  { %v798_v39 = vrot.slane %v790_v49, %v3642_v50  ;;  %v805_v59 = vrot.slane %v791_v51, %v3642_v50  ;;  %v890_v62 = vcombine.low %v3669_v36, %v3672_v37  ;;  %v891_v63 = vcombine.high %v3669_v36, %v3672_v37 }
 0x291   :  { %v582_v0 = vcombine.low %v3681_v52, %v3684_v53  ;;  %v598_v1 = vcombine.low %v3687_v54, %v3690_v55  ;;  %v498_v7 = vcombine.low %v399_v33, %v411_v60  ;;  %v499_v8 = vcombine.high %v399_v33, %v411_v60 }
 0x292   :  { %v806_v3 = vcombine.low %v782_v56, %v798_v39  ;;  %v807_v4 = vcombine.high %v782_v56, %v798_v39  ;;  %v822_v5 = vcombine.low %v789_v58, %v805_v59  ;;  %v823_v6 = vcombine.high %v789_v58, %v805_v59 }
 0x293   :  { %v482_v9 = vcombine.low %v3624_v40, %v405_v61  ;;  %v483_v10 = vcombine.high %v3624_v40, %v405_v61  ;;  %v506_v15 = vrot.slane %v498_v7, %v3642_v50  ;;  %v513_v16 = vrot.slane %v499_v8, %v3642_v50 }
 0x294   :  { %v814_v11 = vrot.slane %v806_v3, %v3644_v57  ;;  %v821_v12 = vrot.slane %v807_v4, %v3644_v57  ;;  %v830_v13 = vrot.slane %v822_v5, %v3644_v57  ;;  %v837_v14 = vrot.slane %v823_v6, %v3644_v57 }
 0x295   :  { %v490_v17 = vrot.slane %v482_v9, %v3642_v50  ;;  %v497_v18 = vrot.slane %v483_v10, %v3642_v50  ;;  %v583_v37 = vcombine.high %v3681_v52, %v3684_v53  ;;  %v599_v43 = vcombine.high %v3687_v54, %v3690_v55 }
 0x296   :  { %v910_v19 = vcombine.low %v814_v11, %v821_v12  ;;  %v2995_v20 = vcombine.high %v814_v11, %v821_v12  ;;  %v926_v40 = vcombine.low %v830_v13, %v837_v14  ;;  %v2996_v21 = vcombine.high %v830_v13, %v837_v14 }
 0x297   :  { %v514_v22 = vcombine.low %v490_v17, %v506_v15  ;;  %v515_v23 = vcombine.high %v490_v17, %v506_v15  ;;  %v530_v24 = vcombine.low %v497_v18, %v513_v16  ;;  %v531_v25 = vcombine.high %v497_v18, %v513_v16 }
 0x298   :  { %v917_v26 = vrot.slane %v910_v19, %v3642_v50  ;;  %v925_v29 = vrot.slane %v2995_v20, %v3642_v50  ;;  %v933_v30 = vrot.slane %v926_v40, %v3642_v50  ;;  %v941_v31 = vrot.slane %v2996_v21, %v3642_v50 }
 0x299   :  { %v522_v32 = vrot.slane %v514_v22, %v3644_v57  ;;  %v529_v33 = vrot.slane %v515_v23, %v3644_v57  ;;  %v538_v35 = vrot.slane %v530_v24, %v3644_v57  ;;  %v545_v36 = vrot.slane %v531_v25, %v3644_v57 }
 0x29a   :  { %v942_v44 = vcombine.low %v917_v26, %v925_v29  ;;  %v958_v45 = vcombine.low %v933_v30, %v941_v31  ;;  %v882_v51 = vrot.slane %v874_v38, %v3644_v57  ;;  %v898_v56 = vrot.slane %v890_v62, %v3644_v57 }
 0x29b   :  { %v618_v46 = vcombine.low %v522_v32, %v529_v33  ;;  %v2991_v47 = vcombine.high %v522_v32, %v529_v33  ;;  %v634_v48 = vcombine.low %v538_v35, %v545_v36  ;;  %v2992_v49 = vcombine.high %v538_v35, %v545_v36 }
 0x29c   :  { %v590_v58 = vrot.slane %v582_v0, %v3644_v57  ;;  %v606_v52 = vrot.slane %v598_v1, %v3644_v57  ;;  %v906_v59 = vcombine.low %v882_v51, %v898_v56  ;;  %v907_v60 = vcombine.high %v882_v51, %v898_v56 }
 0x29d   :  { %v625_v53 = vrot.slane %v618_v46, %v3642_v50  ;;  %v633_v54 = vrot.slane %v2991_v47, %v3642_v50  ;;  %v641_v55 = vrot.slane %v634_v48, %v3642_v50  ;;  %v649_v39 = vrot.slane %v2992_v49, %v3642_v50 }
 0x29e   :  { %v3737_v4 = vcombine.low %v590_v58, %v606_v52  ;;  %v3739_v38 = vcombine.high %v590_v58, %v606_v52  ;;  %3135 = vmatpush3.xpose.msk.msra.mxu0 %vm1270_vm2, %v906_v59  ;;  %3140 = vmatpush3.xpose.msk.msra.mxu1 %vm1270_vm2, %v907_v60  ;;  %v889_v62 = vrot.slane %v875_v42, %v3644_v57 }
 0x29f   :  { %v650_v61 = vcombine.low %v625_v53, %v633_v54  ;;  %v666_v3 = vcombine.low %v641_v55, %v649_v39  ;;  %v905_v0 = vrot.slane %v891_v63, %v3644_v57  ;;  %v597_v1 = vrot.slane %v583_v37, %v3644_v57  ;;  %3144 = vmatprep.subr.mxu0 %v3484_v2 }
 0x2a0   :  { %3149 = vmatprep.subr.mxu1 %v3484_v2  ;;  %v613_v5 = vrot.slane %v599_v43, %v3644_v57  ;;  %v950_v6 = vrot.slane %v942_v44, %v3644_v57  ;;  %v966_v7 = vrot.slane %v958_v45, %v3644_v57  ;;  %v943_v8 = vcombine.high %v917_v26, %v925_v29 }
 0x2a1   :  { %v959_v9 = vcombine.high %v933_v30, %v941_v31  ;;  %v908_v10 = vcombine.low %v889_v62, %v905_v0  ;;  %v909_v11 = vcombine.high %v889_v62, %v905_v0  ;;  %3137 = vmatmul.mubr.msk.f32.vlgmr.msra.gmra.mrb[2].mxu0 %vm1270_vm2, %v3737_v4  ;;  %3142 = vmatmul.mubr.msk.f32.vlgmr.msra.gmra.mrb[6].mxu1 %vm1270_vm2, %v3739_v38 }
 0x2a2   :  { %v658_v27 = vrot.slane %v650_v61, %v3644_v57  ;;  %v674_v28 = vrot.slane %v666_v3, %v3644_v57  ;;  %v651_v42 = vcombine.high %v625_v53, %v633_v54  ;;  %v974_v63 = vcombine.low %v950_v6, %v966_v7  ;;  %3146 = vmatprep.mubr.msk.f32.mxu0 %vm3488_vm1, %v3484_v2 }
 0x2a3   :  { %3145 = vmatpush3.xpose.msk.msra.mxu0 %vm1270_vm2, %v908_v10  ;;  %3150 = vmatpush3.xpose.msk.msra.mxu1 %vm1270_vm2, %v909_v11  ;;  %v975_v12 = vcombine.high %v950_v6, %v966_v7  ;;  %v667_v13 = vcombine.high %v641_v55, %v649_v39  ;;  %v3766_v14 = vcombine.low %v597_v1, %v613_v5 }
 0x2a4   :  { %3151 = vmatprep.mubr.msk.f32.mxu1 %vm3488_vm1, %v3484_v2  ;;  %v3768_v15 = vcombine.high %v597_v1, %v613_v5  ;;  %3154 = vmatprep.subr.mxu0 %v3484_v2  ;;  %v957_v16 = vrot.slane %v943_v8, %v3644_v57  ;;  %v973_v17 = vrot.slane %v959_v9, %v3644_v57  ;;  %v981_v5 = vpop.permute.xlu1 %980 }
 0x2a5   :  { %3159 = vmatprep.subr.mxu1 %v3484_v2  ;;  %v3778_v18 = vcombine.low %v658_v27, %v674_v28  ;;  %v3780_v19 = vcombine.high %v658_v27, %v674_v28  ;;  %v665_v20 = vrot.slane %v651_v42, %v3644_v57  ;;  %v681_v40 = vrot.slane %v667_v13, %v3644_v57 }
 0x2a6   :  { %3147 = vmatmul.mubr.msk.f32.vlgmr.msra.gmra.mrb[4].mxu0 %vm1270_vm2, %v3766_v14  ;;  %3152 = vmatmul.mubr.msk.f32.vlgmr.msra.gmra.mrb[8].mxu1 %vm1270_vm2, %v3768_v15  ;;  %v976_v21 = vcombine.low %v957_v16, %v973_v17  ;;  %v977_v22 = vcombine.high %v957_v16, %v973_v17 }
 0x2a7   :  { %3155 = vmatpush3.xpose.msk.msra.mxu0 %vm1270_vm2, %v974_v63  ;;  %3160 = vmatpush3.xpose.msk.msra.mxu1 %vm1270_vm2, %v975_v12  ;;  %v3802_v23 = vcombine.low %v665_v20, %v681_v40  ;;  %v3804_v24 = vcombine.high %v665_v20, %v681_v40 }
 0x2a8   :  { %3156 = vmatprep.mubr.msk.f32.mxu0 %vm3488_vm1, %v3484_v2  ;;  %3161 = vmatprep.mubr.msk.f32.mxu1 %vm3488_vm1, %v3484_v2 }
 0x2a9   :  { %3164 = vmatprep.subr.mxu0 %v3484_v2  ;;  %3169 = vmatprep.subr.mxu1 %v3484_v2 }
 0x2aa   :  { %3157 = vmatmul.mubr.msk.f32.vlgmr.msra.gmra.mrb[6].mxu0 %vm1270_vm2, %v3778_v18  ;;  %3162 = vmatmul.mubr.msk.f32.vlgmr.msra.gmra.mrb[10].mxu1 %vm1270_vm2, %v3780_v19 }
 0x2ab   :  { %3165 = vmatpush3.xpose.msk.msra.mxu0 %vm1270_vm2, %v976_v21  ;;  %3170 = vmatpush3.xpose.msk.msra.mxu1 %vm1270_vm2, %v977_v22 }
 0x2ac   :  { %3166 = vmatprep.mubr.msk.f32.mxu0 %vm3488_vm1, %v3484_v2  ;;  %3171 = vmatprep.mubr.msk.f32.mxu1 %vm3488_vm1, %v3484_v2 }
 0x2ad   :  { %3174 = vmatprep.subr.mxu0 %v3484_v2  ;;  %3179 = vmatprep.subr.mxu1 %v3484_v2 }
 0x2ae   :  { %3167 = vmatmul.mubr.msk.f32.vlgmr.msra.gmra.mrb[8].mxu0 %vm1270_vm2, %v3802_v23  ;;  %3172 = vmatmul.mubr.msk.f32.vlgmr.msra.gmra.mrb[12].mxu1 %vm1270_vm2, %v3804_v24 }
 0x2af   :  { %3176 = vmatprep.mubr.msk.f32.mxu0 %vm3488_vm1, %v3484_v2  ;;  %3181 = vmatprep.mubr.msk.f32.mxu1 %vm3488_vm1, %v3484_v2 }
 0x374   :  { %v1343_v25 = vpop.f32.mrb[2].mxu0  ;;  %v1419_v26 = vpop.f32.mrb[6].mxu1 }
 0x375   :  { %v1879_v29 = vmul.f32 0.35355338, %v1343_v25  ;;  %v1880_v30 = vmul.f32 0.35355338, %v1419_v26  ;;  %v3138_v31 = vpop.f32.mrb[3].mxu0  ;;  %v3143_v32 = vpop.f32.mrb[7].mxu1 }
 0x377   :  { %v1890_v33 = vsel %vm1270_vm2, %v1880_v30, -inf  ;;  %v1887_v35 = vsel %vm1270_vm2, %v1879_v29, -inf }
 0x378   :  { %1891 = vmax.xlane.f32.xlu1 %v1890_v33  ;;  %1888 = vmax.xlane.f32.xlu0 %v1887_v35 }
 0x379   :  { %v1571_v36 = vpop.f32.mrb[8].mxu1  ;;  %v1495_v37 = vpop.f32.mrb[4].mxu0 }
 0x37a   :  { %v1881_v43 = vmul.f32 0.35355338, %v1495_v37  ;;  %v3148_v44 = vpop.f32.mrb[5].mxu0  ;;  %v3153_v45 = vpop.f32.mrb[9].mxu1  ;;  %v1882_v46 = vmul.f32 0.35355338, %v1571_v36 }
 0x37c   :  { %v1893_v47 = vsel %vm1270_vm2, %v1881_v43, -inf  ;;  %v1896_v53 = vsel %vm1270_vm2, %v1882_v46, -inf }
 0x37d   :  { %1894 = vmax.xlane.f32.xlu0 %v1893_v47  ;;  %v1647_v48 = vpop.f32.mrb[6].mxu0  ;;  %v1723_v49 = vpop.f32.mrb[10].mxu1 }
 0x37e   :  { %v1883_v51 = vmul.f32 0.35355338, %v1647_v48  ;;  %v1884_v56 = vmul.f32 0.35355338, %v1723_v49  ;;  %v3158_v58 = vpop.f32.mrb[7].mxu0  ;;  %v3163_v52 = vpop.f32.mrb[11].mxu1 }
 0x380   :  { %v1899_v54 = vsel %vm1270_vm2, %v1883_v51, -inf  ;;  %v1902_v55 = vsel %vm1270_vm2, %v1884_v56, -inf }
 0x381   :  { %1897 = vmax.xlane.f32.xlu0 %v1896_v53  ;;  %v1875_v39 = vpop.f32.mrb[12].mxu1  ;;  %1900 = vmax.xlane.f32.xlu1 %v1899_v54  ;;  %v1799_v59 = vpop.f32.mrb[8].mxu0 }
 0x382   :  { %v3822_v60 = vmul.f32 0.35355338, %v1875_v39  ;;  %v1885_v61 = vmul.f32 0.35355338, %v1799_v59  ;;  %v3168_v3 = vpop.f32.mrb[9].mxu0  ;;  %v3173_v62 = vpop.f32.mrb[13].mxu1 }
 0x384   :  { %v1905_v0 = vsel %vm1270_vm2, %v1885_v61, -inf  ;;  %v1908_v1 = vsel %vm1270_vm2, %v3822_v60, -inf }
 0x385   :  { %1903 = vmax.xlane.f32.xlu0 %v1902_v55  ;;  %1906 = vmax.xlane.f32.xlu1 %v1905_v0 }
 0x389   :  { %1909 = vmax.xlane.f32.xlu0 %v1908_v1 }
 0x396   :  { %992 = vrot.lane.b32.xlu1 %v3634_v41, %s3485_s2 }
 0x39f   :  { %986 = vrot.lane.b32.xlu0 %v3634_v41, %s3487_s4 }
 0x405   :  { %v1892_v6 = vpop.xlane.xlu1 %1891  ;;  %v1889_v7 = vpop.xlane.xlu0 %1888 }
 0x406   :  { %v1912_v8 = vsub.f32 %v1880_v30, %v1892_v6  ;;  %v1911_v9 = vsub.f32 %v1879_v29, %v1889_v7 }
 0x408   :  { %v1921_v10 = vmul.f32 1.442695, %v1912_v8  ;;  %v1919_v11 = vmul.f32 1.442695, %v1911_v9 }
 0x40a   :  { %v1895_v27 = vpop.xlane.xlu0 %1894  ;;  %3322 = vpow2.f32 %v1921_v10 }
 0x40b   :  { %v1913_v28 = vsub.f32 %v1881_v43, %v1895_v27  ;;  %3324 = vpow2.f32 %v1919_v11 }
 0x40d   :  { %v1923_v42 = vmul.f32 1.442695, %v1913_v28 }
 0x40e   :  { %v1898_v63 = vpop.xlane.xlu0 %1897  ;;  %v1901_v12 = vpop.xlane.xlu1 %1900 }
 0x40f   :  { %3326 = vpow2.f32 %v1923_v42  ;;  %v1914_v13 = vsub.f32 %v1882_v46, %v1898_v63  ;;  %v1915_v16 = vsub.f32 %v1883_v51, %v1901_v12 }
 0x411   :  { %v1925_v17 = vmul.f32 1.442695, %v1914_v13  ;;  %v1927_v20 = vmul.f32 1.442695, %v1915_v16 }
 0x412   :  { %v1904_v40 = vpop.xlane.xlu0 %1903  ;;  %v1907_v21 = vpop.xlane.xlu1 %1906 }
 0x413   :  { %3328 = vpow2.f32 %v1925_v17  ;;  %v1916_v22 = vsub.f32 %v1884_v56, %v1904_v40  ;;  %v1917_v25 = vsub.f32 %v1885_v61, %v1907_v21 }
 0x414   :  { %3330 = vpow2.f32 %v1927_v20  ;;  %v3831_v26 = vpop.eup %3322 }
 0x415   :  { %v1929_v29 = vmul.f32 1.442695, %v1916_v22  ;;  %v1931_v30 = vmul.f32 1.442695, %v1917_v25  ;;  %v3833_v31 = vpop.eup %3324  ;;  %v1938_v33 = vsel %vm1270_vm2, %v3831_v26, 0.0 }
 0x416   :  { %v3835_v32 = vpop.xlane.xlu0 %1909  ;;  %v993_v35 = vpop.permute.xlu1 %992  ;;  %1939 = vadd.xlane.f32.xlu0 %v1938_v33  ;;  %v1935_v36 = vsel %vm1270_vm2, %v3833_v31, 0.0 }
 0x417   :  { %3332 = vpow2.f32 %v1929_v29  ;;  %v1014_v37 = vcombine.low %v981_v5, %v993_v35  ;;  %1936 = vadd.xlane.f32.xlu1 %v1935_v36  ;;  %v1015_v43 = vcombine.high %v981_v5, %v993_v35  ;;  %v1918_v36 = vsub.f32 %v3822_v60, %v3835_v32 }
 0x418   :  { %3334 = vpow2.f32 %v1931_v30 }
 0x419   :  { %v3841_v44 = vpop.eup %3326  ;;  %v1022_v47 = vrot.slane %v1014_v37, %v3642_v50  ;;  %v1029_v48 = vrot.slane %v1015_v43, %v3642_v50  ;;  %v1933_v37 = vmul.f32 1.442695, %v1918_v36 }
 0x41a   :  { %v987_v45 = vpop.permute.xlu0 %986  ;;  %v1941_v46 = vsel %vm1270_vm2, %v3841_v44, 0.0 }
 0x41b   :  { %v998_v49 = vcombine.low %v3634_v41, %v987_v45  ;;  %v999_v51 = vcombine.high %v3634_v41, %v987_v45  ;;  %1942 = vadd.xlane.f32.xlu1 %v1941_v46  ;;  %3336 = vpow2.f32 %v1933_v37 }
 0x41d   :  { %v3849_v56 = vpop.eup %3328  ;;  %v1006_v58 = vrot.slane %v998_v49, %v3642_v50  ;;  %v1013_v52 = vrot.slane %v999_v51, %v3642_v50 }
 0x41e   :  { %v3853_v53 = vpop.eup %3330  ;;  %v1944_v54 = vsel %vm1270_vm2, %v3849_v56, 0.0 }
 0x41f   :  { %v1030_v55 = vcombine.low %v1006_v58, %v1022_v47  ;;  %v1031_v39 = vcombine.high %v1006_v58, %v1022_v47  ;;  %v1046_v59 = vcombine.low %v1013_v52, %v1029_v48  ;;  %v1047_v61 = vcombine.high %v1013_v52, %v1029_v48  ;;  %1945 = vadd.xlane.f32.xlu0 %v1944_v54 }
 0x420   :  { %v1947_v41 = vsel %vm1270_vm2, %v3853_v53, 0.0 }
 0x421   :  { %v3859_v3 = vpop.eup %3332  ;;  %v1038_v62 = vrot.slane %v1030_v55, %v3644_v57  ;;  %v1045_v0 = vrot.slane %v1031_v39, %v3644_v57  ;;  %v1054_v1 = vrot.slane %v1046_v59, %v3644_v57  ;;  %v1061_v5 = vrot.slane %v1047_v61, %v3644_v57  ;;  %1948 = vadd.xlane.f32.xlu1 %v1947_v41 }
 0x422   :  { %v3865_v6 = vpop.eup %3334  ;;  %v1950_v7 = vsel %vm1270_vm2, %v3859_v3, 0.0 }
 0x423   :  { %v1134_v8 = vcombine.low %v1038_v62, %v1045_v0  ;;  %v2997_v9 = vcombine.high %v1038_v62, %v1045_v0  ;;  %v1150_v10 = vcombine.low %v1054_v1, %v1061_v5  ;;  %v2998_v11 = vcombine.high %v1054_v1, %v1061_v5  ;;  %1951 = vadd.xlane.f32.xlu0 %v1950_v7 }
 0x424   :  { %v1953_v27 = vsel %vm1270_vm2, %v3865_v6, 0.0 }
 0x425   :  { %v1141_v28 = vrot.slane %v1134_v8, %v3642_v50  ;;  %v1149_v42 = vrot.slane %v2997_v9, %v3642_v50  ;;  %v1157_v63 = vrot.slane %v1150_v10, %v3642_v50  ;;  %v1165_v12 = vrot.slane %v2998_v11, %v3642_v50  ;;  %v3887_v43 = vpop.eup %3336 }
 0x426   :  { %v1956_v45 = vsel %vm1270_vm2, %v3887_v43, 0.0 }
 0x427   :  { %1954 = vadd.xlane.f32.xlu0 %v1953_v27  ;;  %v1166_v13 = vcombine.low %v1141_v28, %v1149_v42  ;;  %v1182_v16 = vcombine.low %v1157_v63, %v1165_v12  ;;  %v1167_v17 = vcombine.high %v1141_v28, %v1149_v42  ;;  %v1183_v20 = vcombine.high %v1157_v63, %v1165_v12 }
 0x429   :  { %v1174_v40 = vrot.slane %v1166_v13, %v3644_v57  ;;  %v1190_v21 = vrot.slane %v1182_v16, %v3644_v57  ;;  %v1181_v22 = vrot.slane %v1167_v17, %v3644_v57  ;;  %v1197_v25 = vrot.slane %v1183_v20, %v3644_v57 }
 0x42b   :  { %v1198_v29 = vcombine.low %v1174_v40, %v1190_v21  ;;  %v1199_v30 = vcombine.high %v1174_v40, %v1190_v21  ;;  %v1200_v33 = vcombine.low %v1181_v22, %v1197_v25  ;;  %v1201_v35 = vcombine.high %v1181_v22, %v1197_v25 }
 0x42d   :  { %3175 = vmatpush3.msra.mxu0 %v1198_v29  ;;  %3180 = vmatpush3.msra.mxu1 %v1199_v30 }
 0x42e   :  { %3184 = vmatprep.subr.mxu0 %v3484_v2  ;;  %3189 = vmatprep.subr.mxu1 %v3484_v2 }
 0x432   :  { %988 = vrot.lane.b32.xlu1 %v3610_v34, %s3487_s4 }
 0x43d   :  { %982 = vrot.lane.b32.xlu0 %v3610_v34, %s3486_s9 }
 0x456   :  { %1957 = vadd.xlane.f32.xlu1 %v1956_v45 }
 0x467   :  { %994 = vrot.lane.b32.xlu1 %v3610_v34, %s3485_s2 }
 0x4a3   :  { %v1940_v46 = vpop.xlane.xlu0 %1939 }
 0x4a4   :  { %v1937_v47 = vpop.xlane.xlu1 %1936  ;;  %3338 = vrcp.f32 %v1940_v46 }
 0x4a5   :  { %3340 = vrcp.f32 %v1937_v47 }
 0x4a8   :  { %v1943_v48 = vpop.xlane.xlu1 %1942 }
 0x4a9   :  { %3342 = vrcp.f32 %v1943_v48 }
 0x4ac   :  { %v1946_v49 = vpop.xlane.xlu0 %1945 }
 0x4ad   :  { %3344 = vrcp.f32 %v1946_v49 }
 0x4ae   :  { %v3339_v60 = vpop.eup %3338 }
 0x4af   :  { %v3341_v32 = vpop.eup %3340  ;;  %v1968_v51 = vmul.f32 %v3339_v60, %v3831_v26 }
 0x4b0   :  { %v1967_v58 = vmul.f32 %v3341_v32, %v3833_v31  ;;  %v1952_v55 = vpop.xlane.xlu0 %1951 }
 0x4b1   :  { %3182 = vmatmul.mubr.msk.f32.vlgmr.msra.gmra.mrb[14].mxu1 %vm1270_vm2, %v1968_v51 }
 0x4b2   :  { %3177 = vmatmul.mubr.msk.f32.vlgmr.msra.gmra.mrb[10].mxu0 %vm1270_vm2, %v1967_v58  ;;  %3190 = vmatpush3.msra.mxu1 %v1201_v35 }
 0x4b3   :  { %v3343_v52 = vpop.eup %3342  ;;  %3185 = vmatpush3.msra.mxu0 %v1200_v33  ;;  %3186 = vmatprep.mubr.msk.f32.mxu0 %vm3488_vm1, %v3484_v2 }
 0x4b4   :  { %v1969_v54 = vmul.f32 %v3343_v52, %v3841_v44  ;;  %3191 = vmatprep.mubr.msk.f32.mxu1 %vm3488_vm1, %v3484_v2  ;;  %3194 = vmatprep.subr.mxu0 %v3484_v2  ;;  %v1949_v44 = vpop.xlane.xlu1 %1948  ;;  %v1955_v59 = vpop.xlane.xlu0 %1954 }
 0x4b5   :  { %3199 = vmatprep.subr.mxu1 %v3484_v2  ;;  %3346 = vrcp.f32 %v1949_v44 }
 0x4b6   :  { %3187 = vmatmul.mubr.msk.f32.vlgmr.msra.gmra.mrb[12].mxu0 %vm1270_vm2, %v1969_v54  ;;  %3348 = vrcp.f32 %v1952_v55 }
 0x4b7   :  { %v3345_v26 = vpop.eup %3344  ;;  %3196 = vmatprep.mubr.msk.f32.mxu0 %vm3488_vm1, %v3484_v2  ;;  %3350 = vrcp.f32 %v1955_v59 }
 0x4b8   :  { %v1970_v31 = vmul.f32 %v3345_v26, %v3849_v56  ;;  %v989_v39 = vpop.permute.xlu1 %988  ;;  %v983_v0 = vpop.permute.xlu0 %982 }
 0x4b9   :  { %v1066_v41 = vcombine.low %v3610_v34, %v989_v39  ;;  %v1067_v62 = vcombine.high %v3610_v34, %v989_v39 }
 0x4ba   :  { %3192 = vmatmul.mubr.msk.f32.vlgmr.msra.gmra.mrb[16].mxu1 %vm1270_vm2, %v1970_v31 }
 0x4bb   :  { %3201 = vmatprep.mubr.msk.f32.mxu1 %vm3488_vm1, %v3484_v2  ;;  %v1074_v7 = vrot.slane %v1066_v41, %v3642_v50  ;;  %v1081_v8 = vrot.slane %v1067_v62, %v3642_v50 }
 0x4bf   :  { %v3347_v30 = vpop.eup %3346 }
 0x4c0   :  { %v3349_v45 = vpop.eup %3348  ;;  %v1971_v52 = vmul.f32 %v3347_v30, %v3853_v53 }
 0x4c1   :  { %v3351_v48 = vpop.eup %3350  ;;  %v1972_v54 = vmul.f32 %v3349_v45, %v3859_v3 }
 0x4c2   :  { %v1973_v44 = vmul.f32 %v3351_v48, %v3865_v6 }
 0x4e3   :  { %v1958_v61 = vpop.xlane.xlu1 %1957 }
 0x4e4   :  { %3352 = vrcp.f32 %v1958_v61 }
 0x4e7   :  { %v995_v1 = vpop.permute.xlu1 %994 }
 0x4e8   :  { %v1082_v56 = vcombine.low %v983_v0, %v995_v1  ;;  %v1083_v5 = vcombine.high %v983_v0, %v995_v1 }
 0x4ea   :  { %v1090_v9 = vrot.slane %v1082_v56, %v3642_v50  ;;  %v1097_v10 = vrot.slane %v1083_v5, %v3642_v50 }
 0x4ec   :  { %v1098_v11 = vcombine.low %v1074_v7, %v1090_v9  ;;  %v1099_v27 = vcombine.high %v1074_v7, %v1090_v9  ;;  %v1114_v28 = vcombine.low %v1081_v8, %v1097_v10  ;;  %v1115_v42 = vcombine.high %v1081_v8, %v1097_v10 }
 0x4ee   :  { %v1106_v34 = vrot.slane %v1098_v11, %v3644_v57  ;;  %v1113_v63 = vrot.slane %v1099_v27, %v3644_v57  ;;  %v1122_v12 = vrot.slane %v1114_v28, %v3644_v57  ;;  %v1129_v13 = vrot.slane %v1115_v42, %v3644_v57  ;;  %v3353_v58 = vpop.eup %3352 }
 0x4ef   :  { %v1974_v55 = vmul.f32 %v3353_v58, %v3887_v43 }
 0x4f0   :  { %v1202_v16 = vcombine.low %v1106_v34, %v1113_v63  ;;  %v2999_v17 = vcombine.high %v1106_v34, %v1113_v63  ;;  %v1218_v20 = vcombine.low %v1122_v12, %v1129_v13  ;;  %v3000_v40 = vcombine.high %v1122_v12, %v1129_v13 }
 0x4f2   :  { %v1209_v21 = vrot.slane %v1202_v16, %v3642_v50  ;;  %v1217_v22 = vrot.slane %v2999_v17, %v3642_v50  ;;  %v1225_v25 = vrot.slane %v1218_v20, %v3642_v50  ;;  %v1233_v29 = vrot.slane %v3000_v40, %v3642_v50 }
 0x4f4   :  { %v1234_v33 = vcombine.low %v1209_v21, %v1217_v22  ;;  %v1250_v35 = vcombine.low %v1225_v25, %v1233_v29  ;;  %v1235_v36 = vcombine.high %v1209_v21, %v1217_v22  ;;  %v1251_v37 = vcombine.high %v1225_v25, %v1233_v29 }
 0x4f6   :  { %v1242_v46 = vrot.slane %v1234_v33, %v3644_v57  ;;  %v1258_v47 = vrot.slane %v1250_v35, %v3644_v57  ;;  %v1249_v49 = vrot.slane %v1235_v36, %v3644_v57  ;;  %v1265_v60 = vrot.slane %v1251_v37, %v3644_v57 }
 0x4f8   :  { %v1266_v32 = vcombine.low %v1242_v46, %v1258_v47  ;;  %v1267_v51 = vcombine.high %v1242_v46, %v1258_v47  ;;  %v1268_v26 = vcombine.low %v1249_v49, %v1265_v60  ;;  %v1269_v31 = vcombine.high %v1249_v49, %v1265_v60 }
 0x4fa   :  { %3195 = vmatpush3.msra.mxu0 %v1266_v32  ;;  %3200 = vmatpush3.msra.mxu1 %v1267_v51 }
 0x4fb   :  { %3197 = vmatmul.mubr.msk.f32.vlgmr.msra.gmra.mrb[14].mxu0 %vm1270_vm2, %v1971_v52  ;;  %3202 = vmatmul.mubr.msk.f32.vlgmr.msra.gmra.mrb[18].mxu1 %vm1270_vm2, %v1972_v54 }
 0x4fc   :  { %3204 = vmatprep.subr.mxu0 %v3484_v2  ;;  %3209 = vmatprep.subr.mxu1 %v3484_v2 }
 0x4fd   :  { %3205 = vmatpush3.msra.mxu0 %v1268_v26  ;;  %3210 = vmatpush3.msra.mxu1 %v1269_v31 }
 0x4fe   :  { %3206 = vmatprep.mubr.msk.f32.mxu0 %vm3488_vm1, %v3484_v2  ;;  %3211 = vmatprep.mubr.msk.f32.mxu1 %vm3488_vm1, %v3484_v2 }
 0x4ff   :  { %3207 = vmatmul.mubr.msk.f32.vlgmr.msra.gmra.mrb[16].mxu0 %vm1270_vm2, %v1973_v44  ;;  %3212 = vmatmul.mubr.msk.f32.vlgmr.msra.gmra.mrb[20].mxu1 %vm1270_vm2, %v1974_v55 }
 0x584   :  { %v2117_v53 = vpop.f32.mrb[14].mxu1 }
 0x585   :  { %v2044_v3 = vpop.f32.mrb[10].mxu0  ;;  %v3183_v39 = vpop.f32.mrb[15].mxu1  ;;  %v2560_v56 = vadd.f32 %v2117_v53, %v3739_v38 }
 0x586   :  { %v3178_v59 = vpop.f32.mrb[11].mxu0  ;;  %v2559_v6 = vadd.f32 %v2044_v3, %v3737_v4 }
 0x589   :  { %v2190_v61 = vpop.f32.mrb[12].mxu0 }
 0x58a   :  { %v2561_v43 = vadd.f32 %v2190_v61, %v3766_v14  ;;  %v3188_v41 = vpop.f32.mrb[13].mxu0 }
 0x58c   :  { %v2567_v62 = vcombine.low %v2559_v6, %v2561_v43  ;;  %v2568_v0 = vcombine.high %v2559_v6, %v2561_v43 }
 0x58d   :  { %v2263_v1 = vpop.f32.mrb[16].mxu1 }
 0x58e   :  { %v2562_v2 = vadd.f32 %v2263_v1, %v3768_v15  ;;  %v3193_v5 = vpop.f32.mrb[17].mxu1  ;;  %v2575_v9 = vrot.slane %v2567_v62, %v3642_v50  ;;  %v2582_v10 = vrot.slane %v2568_v0, %v3642_v50 }
 0x590   :  { %v2583_v7 = vcombine.low %v2560_v56, %v2562_v2  ;;  %v2584_v8 = vcombine.high %v2560_v56, %v2562_v2 }
 0x592   :  { %v2591_v11 = vrot.slane %v2583_v7, %v3642_v50  ;;  %v2598_v4 = vrot.slane %v2584_v8, %v3642_v50 }
 0x594   :  { %v2599_v14 = vcombine.low %v2575_v9, %v2591_v11  ;;  %v2600_v27 = vcombine.high %v2575_v9, %v2591_v11  ;;  %v2615_v28 = vcombine.low %v2582_v10, %v2598_v4  ;;  %v2616_v42 = vcombine.high %v2582_v10, %v2598_v4 }
 0x596   :  { %v2607_v34 = vrot.slane %v2599_v14, %v3644_v57  ;;  %v2614_v38 = vrot.slane %v2600_v27, %v3644_v57  ;;  %v2623_v15 = vrot.slane %v2615_v28, %v3644_v57  ;;  %v2630_v63 = vrot.slane %v2616_v42, %v3644_v57 }
 0x598   :  { %v2703_v12 = vcombine.low %v2607_v34, %v2614_v38  ;;  %v3025_v13 = vcombine.high %v2607_v34, %v2614_v38  ;;  %v2719_v16 = vcombine.low %v2623_v15, %v2630_v63  ;;  %v3026_v17 = vcombine.high %v2623_v15, %v2630_v63 }
 0x59a   :  { %v2710_v20 = vrot.slane %v2703_v12, %v3642_v50  ;;  %v2718_v40 = vrot.slane %v3025_v13, %v3642_v50  ;;  %v2726_v21 = vrot.slane %v2719_v16, %v3642_v50  ;;  %v2734_v22 = vrot.slane %v3026_v17, %v3642_v50  ;;  %v2872_v16 = vld [vmem:[#allocation8] sm:$0xff]  ;;  %v2873_v17 = vld [vmem:[#allocation8 + $0x8] sm:$0xff] }
 0x59c   :  { %v2735_v25 = vcombine.low %v2710_v20, %v2718_v40  ;;  %v2751_v29 = vcombine.low %v2726_v21, %v2734_v22  ;;  %v2736_v30 = vcombine.high %v2710_v20, %v2718_v40  ;;  %v2752_v33 = vcombine.high %v2726_v21, %v2734_v22  ;;  %v2874_v20 = vld [vmem:[#allocation8 + $0x10] sm:$0xff]  ;;  %v2875_v21 = vld [vmem:[#allocation8 + $0x18] sm:$0xff] }
 0x59d   :  { %v3293_v40 = vpack.c.bf16 %v2873_v17, %v2872_v16 }
 0x59e   :  { %v3960_v35 = vrot.slane %v2735_v25, %v3644_v57  ;;  %v3963_v36 = vrot.slane %v2751_v29, %v3644_v57  ;;  %v2750_v37 = vrot.slane %v2736_v30, %v3644_v57  ;;  %v2766_v45 = vrot.slane %v2752_v33, %v3644_v57 }
 0x59f   :  { %3294 = vmatprep.subr.bf16.mxu0 %v3293_v40  ;;  %v3297_v30 = vpack.c.bf16 %v2875_v21, %v2874_v20 }
 0x5a0   :  { %v2768_v46 = vcombine.high %v3960_v35, %v3963_v36  ;;  %v2767_v47 = vcombine.low %v3960_v35, %v3963_v36  ;;  %v2769_v48 = vcombine.low %v2750_v37, %v2766_v45  ;;  %v2770_v49 = vcombine.high %v2750_v37, %v2766_v45  ;;  %3296 = vmatpush3.bf16.msra.mxu0 %v3293_v40  ;;  %v3029_v36 = vld [vmem:[%s4028_s6] ss:$0 sm:$0xff] }
 0x5a1   :  { %3298 = vmatprep.subr.bf16.mxu0 %v3297_v30 }
 0x5a2   :  { %2841 = vrot.lane.b32.xlu0 %v2768_v46, %s3479_s14 }
 0x5a4   :  { %3300 = vmatpush3.bf16.msra.mxu0 %v3297_v30 }
 0x5a6   :  { %2849 = vrot.lane.b32.xlu0 %v2769_v48, %s3491_s10 }
 0x5aa   :  { %2857 = vrot.lane.b32.xlu0 %v2770_v49, %s3482_s27 }
 0x5ce   :  { %v2336_v60 = vpop.f32.mrb[14].mxu0  ;;  %v2409_v32 = vpop.f32.mrb[18].mxu1 }
 0x5cf   :  { %v3198_v51 = vpop.f32.mrb[15].mxu0  ;;  %v3203_v58 = vpop.f32.mrb[19].mxu1  ;;  %v2563_v26 = vadd.f32 %v2336_v60, %v3778_v18  ;;  %v2564_v31 = vadd.f32 %v2409_v32, %v3780_v19 }
 0x5d2   :  { %v2482_v52 = vpop.f32.mrb[16].mxu0  ;;  %v2555_v54 = vpop.f32.mrb[20].mxu1 }
 0x5d3   :  { %v2565_v44 = vadd.f32 %v2482_v52, %v3802_v23  ;;  %v2566_v55 = vadd.f32 %v2555_v54, %v3804_v24  ;;  %v3208_v53 = vpop.f32.mrb[17].mxu0  ;;  %v3213_v3 = vpop.f32.mrb[21].mxu1 }
 0x5d5   :  { %v2635_v39 = vcombine.low %v2563_v26, %v2565_v44  ;;  %v2636_v59 = vcombine.high %v2563_v26, %v2565_v44  ;;  %v2651_v61 = vcombine.low %v2564_v31, %v2566_v55  ;;  %v2652_v6 = vcombine.high %v2564_v31, %v2566_v55 }
 0x5d7   :  { %v2643_v43 = vrot.slane %v2635_v39, %v3642_v50  ;;  %v2650_v41 = vrot.slane %v2636_v59, %v3642_v50  ;;  %v2659_v62 = vrot.slane %v2651_v61, %v3642_v50  ;;  %v2666_v18 = vrot.slane %v2652_v6, %v3642_v50 }
 0x5d9   :  { %v2667_v0 = vcombine.low %v2643_v43, %v2659_v62  ;;  %v2668_v19 = vcombine.high %v2643_v43, %v2659_v62  ;;  %v2683_v1 = vcombine.low %v2650_v41, %v2666_v18  ;;  %v2684_v23 = vcombine.high %v2650_v41, %v2666_v18 }
 0x5db   :  { %v2675_v24 = vrot.slane %v2667_v0, %v3644_v57  ;;  %v2682_v56 = vrot.slane %v2668_v19, %v3644_v57  ;;  %v2691_v2 = vrot.slane %v2683_v1, %v3644_v57  ;;  %v2698_v5 = vrot.slane %v2684_v23, %v3644_v57 }
 0x5dd   :  { %v2771_v7 = vcombine.low %v2675_v24, %v2682_v56  ;;  %v3027_v8 = vcombine.high %v2675_v24, %v2682_v56  ;;  %v2787_v9 = vcombine.low %v2691_v2, %v2698_v5  ;;  %v3028_v10 = vcombine.high %v2691_v2, %v2698_v5 }
 0x5df   :  { %v2778_v11 = vrot.slane %v2771_v7, %v3642_v50  ;;  %v2786_v4 = vrot.slane %v3027_v8, %v3642_v50  ;;  %v2794_v14 = vrot.slane %v2787_v9, %v3642_v50  ;;  %v2802_v27 = vrot.slane %v3028_v10, %v3642_v50 }
 0x5e1   :  { %v2803_v28 = vcombine.low %v2778_v11, %v2786_v4  ;;  %v2819_v42 = vcombine.low %v2794_v14, %v2802_v27  ;;  %v2804_v34 = vcombine.high %v2778_v11, %v2786_v4  ;;  %v2820_v38 = vcombine.high %v2794_v14, %v2802_v27 }
 0x5e3   :  { %v2811_v15 = vrot.slane %v2803_v28, %v3644_v57  ;;  %v2827_v63 = vrot.slane %v2819_v42, %v3644_v57  ;;  %v2818_v12 = vrot.slane %v2804_v34, %v3644_v57  ;;  %v2834_v13 = vrot.slane %v2820_v38, %v3644_v57 }
 0x5e5   :  { %v2836_v22 = vcombine.high %v2811_v15, %v2827_v63  ;;  %v2835_v25 = vcombine.low %v2811_v15, %v2827_v63  ;;  %v2837_v50 = vcombine.low %v2818_v12, %v2834_v13  ;;  %v2838_v29 = vcombine.high %v2818_v12, %v2834_v13 }
 0x5e7   :  { %2843 = vrot.lane.b32.xlu1 %v2836_v22, %s3479_s14 }
 0x5eb   :  { %2851 = vrot.lane.b32.xlu1 %v2837_v50, %s3491_s10 }
 0x5ef   :  { %2859 = vrot.lane.b32.xlu1 %v2838_v29, %s3482_s27  ;;  %s3446_s27 = scalar_lea.vmem %s2973_s0, 256 }
 0x5f0   :  { %p3447_p4 = scmp.ne.s32.totalorder %s2973_s0, %s3446_s27  ;;  %p3452_p6 = scmp.lt.s32.totalorder %s3446_s27, %s3446_s27 }
 0x5f2   :  { %p3453_p7 = por %p3452_p6, %p3451_p5 }
 0x5f4   :  { %p3454_p8 = pnand %p3453_p7, %p3447_p4 }
 0x614   :  { %v2842_v57 = vpop.permute.xlu0 %2841 }
 0x615   :  { %v2863_v37 = vsel %vm1270_vm2, %v2767_v47, %v2842_v57 }
 0x618   :  { %v2850_v33 = vpop.permute.xlu0 %2849 }
 0x619   :  { %v2865_v45 = vsel %vm93_vm0, %v2863_v37, %v2850_v33 }
 0x61c   :  { %v2858_v46 = vpop.permute.xlu0 %2857 }
 0x61d   :  { %v2868_v48 = vsel %vm2867_vm3, %v2865_v45, %v2858_v46 }
 0x61e   :  { %3354 = vtanh.f32 %v2868_v48 }
 0x628   :  { %v3355_v49 = vpop.eup %3354 }
 0x629   :  { %3222 = vmatprep.mubr.msk.f32.mxu0 %vm2883_vm4, %v3355_v49 }
 0x659   :  { %v2844_v60 = vpop.permute.xlu1 %2843 }
 0x65a   :  { %v2864_v51 = vsel %vm1270_vm2, %v2835_v25, %v2844_v60 }
 0x65d   :  { %v2852_v32 = vpop.permute.xlu1 %2851 }
 0x65e   :  { %v2866_v58 = vsel %vm93_vm0, %v2864_v51, %v2852_v32 }
 0x661   :  { %v2860_v52 = vpop.permute.xlu1 %2859 }
 0x662   :  { %v2869_v54 = vsel %vm2867_vm3, %v2866_v58, %v2860_v52 }
 0x663   :  { %3356 = vtanh.f32 %v2869_v54 }
 0x66d   :  { %v3357_v35 = vpop.eup %3356 }
 0x66e   :  { %3223 = vmatmul.mubr.msk.f32.vlgmr.msra.gmra.mrb[18].mxu0 %vm2883_vm4, %v3357_v35 }
 0x741   :  { %v3224_v47 = vpop.f32.mrb[18].mxu0 }
 0x742   :  { %v2962_v26 = vadd.f32 %v3224_v47, %v3029_v36  ;;  %v2956_v31 = vpop.f32.mrb[19].mxu0 }
 0x743   :  { %v2957_v44 = vadd.f32 %v3029_v36, %v2956_v31 }
 0x744   :  { %2966 = vst [vmem:[#allocation10 + $0x8] sm:$0xff] %v2962_v26 }
 0x745   :  { %2965 = vst [vmem:[#allocation10] sm:$0xff] %v2957_v44 }
 0x746   :  { %3457 = shalt.err (!%p3454_p8)
}
 0x747   :  { %s3458_s6 = scalar_lea.hbm %s4029_s7, 256 }
 0x748   :  { %p3459_p9 = scmp.ne.s32.totalorder %s4029_s7, %s3458_s6  ;;  %p3462_p10 = scmp.lt.u32.totalorder %s3458_s6, %s4029_s7 }
 0x74a   :  { %p3464_p11 = pnand %p3462_p10, %p3459_p9 }
 0x74c   :  { %3467 = shalt.err (!%p3464_p11)
}
 0x74d   :  { %2978 = dma.vmem_to_hbm [thread:$0]  %s2973_s0, 256, %s4029_s7, [#allocation4], %s3478_s13, %s3478_s13, %s3479_s14  }
 0x74e   :  { %3474 = dma.done.wait [#allocation4], 256  }
 0x74f   :  { %3475 = vsyncadd [#allocation4], 4294967040 }
 0x750   :  { %2982 = vsyncpa [#allocation3], 1 }
 0x751   :  { %2983 = vsyncpa [#allocation6], 1 }
 0x752   :  { %2984 = vsyncpa [#allocation9], 1 }
 0x753   :  { %2985 = vsyncpa [#allocation4], 1 }

</bundles_post_ra>
